<compile_context>
chip_gen: v7x
topology: tpu7x:2x2x1
jax: 0.10.0
libtpu: 0.0.40
codegen_flags: <defaults>
</compile_context>

<pallas_src>
import numpy as np
import jax
import jax.numpy as jnp
from jax.experimental import pallas as pl
from jax.experimental.pallas import tpu as pltpu

PATCH_T, PATCH_H, PATCH_W = 2, 14, 14
P_PIX = PATCH_T * PATCH_H * PATCH_W            # 392 pixels per tube-patch
IMNET_MEAN = (0.485, 0.456, 0.406)
IMNET_STD = (0.229, 0.224, 0.225)


def _round_up(x, m):
    return (x + m - 1) // m * m


def _choose_tiling(M, tm_max=512):
    """Row tile + padded row count. Prefers an even grid step count >= 2 so the
    'parallel' grid axis can occupy both TensorCores on v7x."""
    M8 = _round_up(max(M, 1), 8)
    if M8 < 16:
        return M8, M8
    steps = max(2, -(-M8 // tm_max))
    if steps % 2:
        steps += 1
    tm = _round_up(-(-M8 // steps), 8)
    return tm, tm * steps


# -------------------------- glue: mask construction (static, matches original) ----------
def get_time_masks(n_timesteps, spatial_size=(16, 16), temporal_size=2,
                   spatial_dim=(224, 224), temporal_dim=16, as_bool=False):
    assert n_timesteps % temporal_size == 0
    xd, yd = spatial_dim
    t = temporal_dim
    num_patches_spatial = xd / spatial_size[0] * xd / spatial_size[0]
    num_patches_time = t / temporal_size
    patches_n_timesteps = int(num_patches_spatial * n_timesteps // temporal_size)
    patch_idcs = np.arange(int(num_patches_spatial * num_patches_time))
    if as_bool:
        mask_enc = patch_idcs < patches_n_timesteps
        mask_pred = patch_idcs >= patches_n_timesteps
        full_mask = patch_idcs >= 0
    else:
        mask_enc = patch_idcs[:patches_n_timesteps]
        mask_pred = patch_idcs[patches_n_timesteps:]
        full_mask = patch_idcs
    return mask_enc, mask_pred, full_mask


# -------------------------- glue: tube patchify, pixel-major (pure reshape/transpose) ---
def patchify_pix_major(x):
    """[B, C, T, H, W] -> [B, N, P_PIX*C] matching
    rearrange('b c (t p0) (h p1) (w p2) -> b (t h w) (p0 p1 p2 c)')  i.e. 'b n (p c)'."""
    B, C, T, H, W = x.shape
    t, h, w = T // PATCH_T, H // PATCH_H, W // PATCH_W
    xr = x.reshape(B, C, t, PATCH_T, h, PATCH_H, w, PATCH_W)
    xr = xr.transpose(0, 2, 4, 6, 3, 5, 7, 1)          # B, t, h, w, p0, p1, p2, C
    return xr.reshape(B, t * h * w, P_PIX * C)


# -------------------------- fused Pallas kernel: targets + stand-in encoder MLP ---------
def _make_fused_kernel(l_valid):
    npix = l_valid // 3
    inv_npix = 1.0 / npix
    inv_nm1 = 1.0 / (npix - 1)

    def kernel(tok_ref, w1_ref, b1_ref, w2_ref, b2_ref, preds_ref, tgt_ref):
        x_full = tok_ref[...]                              # (tm, K_pad) f32
        x = x_full[:, :l_valid]                            # (tm, 1176), lanes = p*3 + c

        # ---------- targets: un-normalize + per-(patch, channel) standardize ----------
        lane = jax.lax.broadcasted_iota(jnp.int32, x.shape, 1)
        c = lane % 3
        is0, is1, is2 = (c == 0), (c == 1), (c == 2)
        im_mean = jnp.where(is0, IMNET_MEAN[0],
                            jnp.where(is1, IMNET_MEAN[1], IMNET_MEAN[2]))
        im_std = jnp.where(is0, IMNET_STD[0],
                           jnp.where(is1, IMNET_STD[1], IMNET_STD[2]))
        un = x * im_std + im_mean                          # un-normalize

        def csum(v, m):                                    # per-channel lane reduction
            return jnp.sum(jnp.where(m, v, 0.0), axis=-1, keepdims=True)

        mu = jnp.where(is0, csum(un, is0),
                       jnp.where(is1, csum(un, is1), csum(un, is2))) * inv_npix
        diff = un - mu
        d2 = diff * diff
        var = jnp.where(is0, csum(d2, is0),
                        jnp.where(is1, csum(d2, is1), csum(d2, is2))) * inv_nm1
        denom = jnp.sqrt(var) + 1e-6                       # unbiased std + eps
        tgt_ref[...] = (diff / denom).astype(tgt_ref.dtype)

        # ---------- preds: stand-in 2-layer MLP on the pred-patch tokens --------------
        # bf16 cast happens here (no separate XLA cast/materialization pass).
        xb = x_full.astype(jnp.bfloat16)                   # K zero-padded to 1280
        h = jnp.dot(xb, w1_ref[...],
                    preferred_element_type=jnp.float32) + b1_ref[...]
        h = jax.nn.gelu(h, approximate=True)
        o = jnp.dot(h.astype(jnp.bfloat16), w2_ref[...],
                    preferred_element_type=jnp.float32) + b2_ref[...]
        preds_ref[...] = o.astype(preds_ref.dtype)

    return kernel


def fused_targets_preds(tok, w1, b1, w2, b2, *, tm_max=512, preds_dtype=jnp.bfloat16):
    """tok: [M, L] pixel-major patch tokens (L = P_PIX * 3). Returns (preds, targets)."""
    M, L = tok.shape
    assert L % 3 == 0
    D = w1.shape[1]
    assert w1.shape[0] == L and w2.shape == (D, L) and b1.shape == (D,) and b2.shape == (L,)

    K_pad = _round_up(L, 128)                  # 1176 -> 1280: aligned MXU contraction
    tm, M_pad = _choose_tiling(M, tm_max)

    tok_p = tok.astype(jnp.float32)
    if (M_pad != M) or (K_pad != L):
        tok_p = jnp.pad(tok_p, ((0, M_pad - M), (0, K_pad - L)))

    w1_b = w1.astype(jnp.bfloat16)
    if K_pad != L:
        w1_b = jnp.pad(w1_b, ((0, K_pad - L), (0, 0)))     # zero rows: no contribution
    w2_b = w2.astype(jnp.bfloat16)
    b1_2d = jnp.reshape(b1, (1, D)).astype(jnp.float32)
    b2_2d = jnp.reshape(b2, (1, L)).astype(jnp.float32)

    kernel = _make_fused_kernel(L)
    preds, targets = pl.pallas_call(
        kernel,
        out_shape=(jax.ShapeDtypeStruct((M_pad, L), preds_dtype),
                   jax.ShapeDtypeStruct((M_pad, L), jnp.float32)),
        grid=(M_pad // tm,),
        in_specs=[
            pl.BlockSpec((tm, K_pad), lambda i: (i, 0)),   # row-tiled tokens (read once)
            pl.BlockSpec((K_pad, D), lambda i: (0, 0)),    # resident weights
            pl.BlockSpec((1, D), lambda i: (0, 0)),
            pl.BlockSpec((D, L), lambda i: (0, 0)),
            pl.BlockSpec((1, L), lambda i: (0, 0)),
        ],
        out_specs=(pl.BlockSpec((tm, L), lambda i: (i, 0)),
                   pl.BlockSpec((tm, L), lambda i: (i, 0))),
        compiler_params=pltpu.CompilerParams(
            dimension_semantics=("parallel",),
            vmem_limit_bytes=32 << 20),
    )(tok_p, w1_b, b1_2d, w2_b, b2_2d)
    if M_pad != M:
        preds, targets = preds[:M], targets[:M]
    return preds, targets


# -------------------------- forward pass ------------------------------------------------
def anticipative_forward_no_ar(x, params, *, frames_per_clip, nb_context_frames):
    B, C, T, H, W = x.shape
    assert C == 3, "ImageNet mean/std selection in the kernel assumes 3 channels"
    # NOTE: original hard-codes spatial_dim=(224, 224); we pass the actual (H, W) so the
    # identical formula stays self-consistent at small synthetic shapes.
    _m_enc, m_pred, _full_m = get_time_masks(
        nb_context_frames, spatial_size=(PATCH_H, PATCH_W), temporal_size=PATCH_T,
        spatial_dim=(H, W), temporal_dim=frames_per_clip, as_bool=True)
    pred_idx = np.nonzero(m_pred)[0]            # static; boolean mask is a contiguous tail
    n_pred = int(pred_idx.size)
    assert n_pred > 0

    t, h, w = T // PATCH_T, H // PATCH_H, W // PATCH_W
    N = t * h * w
    pred_start = int(pred_idx[0])
    # pred mask is a contiguous tail aligned to a temporal-tube boundary
    assert pred_idx[-1] == N - 1 and n_pred == N - pred_start
    assert pred_start % (h * w) == 0
    t_start = pred_start // (h * w)

    # Slice the clip to the pred-tail frames BEFORE patchify (saves the XLA transpose
    # pass over the context frames).
    x_tail = jax.lax.slice_in_dim(x, t_start * PATCH_T, T, axis=2)
    tok3 = patchify_pix_major(x_tail)                       # [B, Np, P_PIX*C]  'b n (p c)'
    assert tok3.shape[1] == n_pred
    tok = tok3.reshape(B * n_pred, P_PIX * C)

    # --- single fused Pallas kernel: targets (per-patch standardize) + preds (MLP) ---
    # TODO(synk): `self.encoder(x, masks_pred, decoder_blocks=-1)` is an externally-injected
    # VideoMAE-v2 network (not defined in this module); a deterministic 2-layer MLP over the
    # pred-patch tokens stands in for it.
    preds, targets = fused_targets_preds(
        tok, params["w1"], params["b1"], params["w2"], params["b2"])

    preds = preds.reshape(B, n_pred, P_PIX * C)
    targets = targets.reshape(B, n_pred, P_PIX * C)          # already 'b n (p c)'
    return preds, targets


# -------------------------- pure-JAX reference for the target path ----------------------
def ref_targets(x, pred_idx):
    mean = jnp.asarray(IMNET_MEAN, jnp.float32).reshape(1, 3, 1, 1, 1)
    std = jnp.asarray(IMNET_STD, jnp.float32).reshape(1, 3, 1, 1, 1)
    un = x * std + mean
    B, C, T, H, W = x.shape
    t, h, w = T // PATCH_T, H // PATCH_H, W // PATCH_W
    vs = (un.reshape(B, C, t, PATCH_T, h, PATCH_H, w, PATCH_W)
            .transpose(0, 2, 4, 6, 3, 5, 7, 1)
            .reshape(B, t * h * w, P_PIX, C))
    sd = jnp.sqrt(jnp.var(vs, axis=-2, ddof=1, keepdims=True)) + 1e-6
    mu = jnp.mean(vs, axis=-2, keepdims=True)
    vp = ((vs - mu) / sd).reshape(B, t * h * w, P_PIX * C)
    return vp[:, pred_idx, :]


if __name__ == "__main__":
    # Small shapes consistent with the module: tube-patch (2, 14, 14), T % 2 == 0,
    # H, W multiples of 14, nb_context_frames even.
    B, C, T, H, W = 2, 3, 4, 28, 28
    frames_per_clip = T
    nb_context_frames = 2
    D_HID = 256                                  # 256-aligned hidden for v6e/v7x MXU width
    patch_dim = P_PIX * C                        # 1176

    key = jax.random.PRNGKey(0)
    k1, k2, kx = jax.random.split(key, 3)
    params = {
        "w1": 0.02 * jax.random.normal(k1, (patch_dim, D_HID), jnp.float32),
        "b1": jnp.zeros((D_HID,), jnp.float32),
        "w2": 0.02 * jax.random.normal(k2, (D_HID, patch_dim), jnp.float32),
        "b2": jnp.zeros((patch_dim,), jnp.float32),
    }
    x = jax.random.normal(kx, (B, C, T, H, W), jnp.float32)

    preds, targets = anticipative_forward_no_ar(
        x, params, frames_per_clip=frames_per_clip, nb_context_frames=nb_context_frames)
    jax.block_until_ready((preds, targets))

    # Sanity-check the Pallas target path against a pure-JAX reference.
    _, m_pred, _ = get_time_masks(nb_context_frames, spatial_size=(PATCH_H, PATCH_W),
                                  temporal_size=PATCH_T, spatial_dim=(H, W),
                                  temporal_dim=frames_per_clip, as_bool=True)
    ref = ref_targets(x, np.nonzero(m_pred)[0])
    assert targets.shape == ref.shape and preds.shape == ref.shape
    np.testing.assert_allclose(np.asarray(targets), np.asarray(ref), rtol=1e-5, atol=1e-5)

    print("KERNEL_OK")
</pallas_src>

<mosaic_0001>
module attributes {stable_mosaic.version = 11 : i64} {
  func.func @kernel(%arg0: i32, %arg1: memref<8x1280xf32, #tpu.memory_space<vmem>>, %arg2: memref<1280x256xbf16, #tpu.memory_space<vmem>>, %arg3: memref<1x256xf32, #tpu.memory_space<vmem>>, %arg4: memref<256x1176xbf16, #tpu.memory_space<vmem>>, %arg5: memref<1x1176xf32, #tpu.memory_space<vmem>>, %arg6: memref<8x1176xbf16, #tpu.memory_space<vmem>>, %arg7: memref<8x1176xf32, #tpu.memory_space<vmem>>) attributes {dimension_semantics = [#tpu.dimension_semantics<parallel>], iteration_bounds = array<i64: 1>, scalar_prefetch = 0 : i64, scratch_operands = 0 : i64, tpu.core_type = #tpu.core_type<tc>, window_params = [{transform_indices = @transform_0, window_bounds = array<i64: 8, 1280>}, {pipeline_mode = #tpu.pipeline_mode<synchronous>, transform_indices = @transform_1, window_bounds = array<i64: 1280, 256>}, {pipeline_mode = #tpu.pipeline_mode<synchronous>, transform_indices = @transform_2, window_bounds = array<i64: 1, 256>}, {pipeline_mode = #tpu.pipeline_mode<synchronous>, transform_indices = @transform_3, window_bounds = array<i64: 256, 1176>}, {pipeline_mode = #tpu.pipeline_mode<synchronous>, transform_indices = @transform_4, window_bounds = array<i64: 1, 1176>}, {transform_indices = @transform_5, window_bounds = array<i64: 8, 1176>}, {transform_indices = @transform_6, window_bounds = array<i64: 8, 1176>}]} {
    %c0 = arith.constant 0 : index
    %c0_0 = arith.constant 0 : index
    %0 = vector.load %arg1[%c0, %c0_0] : memref<8x1280xf32, #tpu.memory_space<vmem>>, vector<8x1280xf32>
    %1 = vector.extract_strided_slice %0 {offsets = [0, 0], sizes = [8, 1176], strides = [1, 1]} : vector<8x1280xf32> to vector<8x1176xf32>
    %2 = tpu.iota {dimensions = array<i32: 1>} : vector<8x1176xi32>
    %c3_i32 = arith.constant 3 : i32
    %c0_i32 = arith.constant 0 : i32
    %3 = arith.cmpi eq, %c3_i32, %c0_i32 : i32
    %c1_i32 = arith.constant 1 : i32
    %4 = arith.select %3, %c1_i32, %c3_i32 : i32
    %5 = vector.broadcast %4 : i32 to vector<8x1176xi32>
    %6 = arith.remsi %2, %5 : vector<8x1176xi32>
    %c0_i32_1 = arith.constant 0 : i32
    %7 = vector.broadcast %c0_i32_1 : i32 to vector<8x1176xi32>
    %8 = arith.cmpi ne, %6, %7 : vector<8x1176xi32>
    %c0_i32_2 = arith.constant 0 : i32
    %9 = vector.broadcast %c0_i32_2 : i32 to vector<8x1176xi32>
    %10 = arith.cmpi slt, %6, %9 : vector<8x1176xi32>
    %c0_i32_3 = arith.constant 0 : i32
    %11 = arith.cmpi slt, %4, %c0_i32_3 : i32
    %12 = vector.broadcast %11 : i1 to vector<8x1176xi1>
    %13 = vector.broadcast %12 : vector<8x1176xi1> to vector<8x1176xi1>
    %14 = arith.xori %10, %13 : vector<8x1176xi1>
    %15 = arith.andi %14, %8 : vector<8x1176xi1>
    %16 = vector.broadcast %4 : i32 to vector<8x1176xi32>
    %17 = arith.addi %6, %16 : vector<8x1176xi32>
    %18 = arith.select %15, %17, %6 : vector<8x1176xi1>, vector<8x1176xi32>
    %c0_i32_4 = arith.constant 0 : i32
    %19 = vector.broadcast %c0_i32_4 : i32 to vector<8x1176xi32>
    %20 = arith.cmpi eq, %18, %19 : vector<8x1176xi32>
    %c1_i32_5 = arith.constant 1 : i32
    %21 = vector.broadcast %c1_i32_5 : i32 to vector<8x1176xi32>
    %22 = arith.cmpi eq, %18, %21 : vector<8x1176xi32>
    %c2_i32 = arith.constant 2 : i32
    %23 = vector.broadcast %c2_i32 : i32 to vector<8x1176xi32>
    %24 = arith.cmpi eq, %18, %23 : vector<8x1176xi32>
    %cst = arith.constant 4.560000e-01 : f32
    %cst_6 = arith.constant 4.060000e-01 : f32
    %25 = vector.broadcast %cst : f32 to vector<8x1176xf32>
    %26 = vector.broadcast %cst_6 : f32 to vector<8x1176xf32>
    %27 = arith.select %22, %25, %26 : vector<8x1176xi1>, vector<8x1176xf32>
    %cst_7 = arith.constant 4.850000e-01 : f32
    %28 = vector.broadcast %cst_7 : f32 to vector<8x1176xf32>
    %29 = arith.select %20, %28, %27 : vector<8x1176xi1>, vector<8x1176xf32>
    %cst_8 = arith.constant 2.240000e-01 : f32
    %cst_9 = arith.constant 2.250000e-01 : f32
    %30 = vector.broadcast %cst_8 : f32 to vector<8x1176xf32>
    %31 = vector.broadcast %cst_9 : f32 to vector<8x1176xf32>
    %32 = arith.select %22, %30, %31 : vector<8x1176xi1>, vector<8x1176xf32>
    %cst_10 = arith.constant 2.290000e-01 : f32
    %33 = vector.broadcast %cst_10 : f32 to vector<8x1176xf32>
    %34 = arith.select %20, %33, %32 : vector<8x1176xi1>, vector<8x1176xf32>
    %35 = arith.mulf %1, %34 : vector<8x1176xf32>
    %36 = arith.addf %35, %29 : vector<8x1176xf32>
    %cst_11 = arith.constant 0.000000e+00 : f32
    %37 = vector.broadcast %cst_11 : f32 to vector<8x1176xf32>
    %38 = arith.select %20, %36, %37 : vector<8x1176xi1>, vector<8x1176xf32>
    %cst_12 = arith.constant dense<0.000000e+00> : vector<8xf32>
    %39 = vector.multi_reduction <add>, %38, %cst_12 [1] : vector<8x1176xf32> to vector<8xf32>
    %40 = vector.shape_cast %39 : vector<8xf32> to vector<8x1xf32>
    %cst_13 = arith.constant 0.000000e+00 : f32
    %41 = vector.broadcast %cst_13 : f32 to vector<8x1176xf32>
    %42 = arith.select %22, %36, %41 : vector<8x1176xi1>, vector<8x1176xf32>
    %cst_14 = arith.constant dense<0.000000e+00> : vector<8xf32>
    %43 = vector.multi_reduction <add>, %42, %cst_14 [1] : vector<8x1176xf32> to vector<8xf32>
    %44 = vector.shape_cast %43 : vector<8xf32> to vector<8x1xf32>
    %cst_15 = arith.constant 0.000000e+00 : f32
    %45 = vector.broadcast %cst_15 : f32 to vector<8x1176xf32>
    %46 = arith.select %24, %36, %45 : vector<8x1176xi1>, vector<8x1176xf32>
    %cst_16 = arith.constant dense<0.000000e+00> : vector<8xf32>
    %47 = vector.multi_reduction <add>, %46, %cst_16 [1] : vector<8x1176xf32> to vector<8xf32>
    %48 = vector.shape_cast %47 : vector<8xf32> to vector<8x1xf32>
    %49 = vector.shape_cast %44 : vector<8x1xf32> to vector<8x1xf32>
    %50 = vector.broadcast %49 : vector<8x1xf32> to vector<8x1176xf32>
    %51 = vector.shape_cast %48 : vector<8x1xf32> to vector<8x1xf32>
    %52 = vector.broadcast %51 : vector<8x1xf32> to vector<8x1176xf32>
    %53 = arith.select %22, %50, %52 : vector<8x1176xi1>, vector<8x1176xf32>
    %54 = vector.shape_cast %40 : vector<8x1xf32> to vector<8x1xf32>
    %55 = vector.broadcast %54 : vector<8x1xf32> to vector<8x1176xf32>
    %56 = arith.select %20, %55, %53 : vector<8x1176xi1>, vector<8x1176xf32>
    %cst_17 = arith.constant 0.00255102036 : f32
    %57 = vector.broadcast %cst_17 : f32 to vector<8x1176xf32>
    %58 = arith.mulf %56, %57 : vector<8x1176xf32>
    %59 = arith.subf %36, %58 : vector<8x1176xf32>
    %60 = arith.mulf %59, %59 : vector<8x1176xf32>
    %cst_18 = arith.constant 0.000000e+00 : f32
    %61 = vector.broadcast %cst_18 : f32 to vector<8x1176xf32>
    %62 = arith.select %20, %60, %61 : vector<8x1176xi1>, vector<8x1176xf32>
    %cst_19 = arith.constant dense<0.000000e+00> : vector<8xf32>
    %63 = vector.multi_reduction <add>, %62, %cst_19 [1] : vector<8x1176xf32> to vector<8xf32>
    %64 = vector.shape_cast %63 : vector<8xf32> to vector<8x1xf32>
    %cst_20 = arith.constant 0.000000e+00 : f32
    %65 = vector.broadcast %cst_20 : f32 to vector<8x1176xf32>
    %66 = arith.select %22, %60, %65 : vector<8x1176xi1>, vector<8x1176xf32>
    %cst_21 = arith.constant dense<0.000000e+00> : vector<8xf32>
    %67 = vector.multi_reduction <add>, %66, %cst_21 [1] : vector<8x1176xf32> to vector<8xf32>
    %68 = vector.shape_cast %67 : vector<8xf32> to vector<8x1xf32>
    %cst_22 = arith.constant 0.000000e+00 : f32
    %69 = vector.broadcast %cst_22 : f32 to vector<8x1176xf32>
    %70 = arith.select %24, %60, %69 : vector<8x1176xi1>, vector<8x1176xf32>
    %cst_23 = arith.constant dense<0.000000e+00> : vector<8xf32>
    %71 = vector.multi_reduction <add>, %70, %cst_23 [1] : vector<8x1176xf32> to vector<8xf32>
    %72 = vector.shape_cast %71 : vector<8xf32> to vector<8x1xf32>
    %73 = vector.shape_cast %68 : vector<8x1xf32> to vector<8x1xf32>
    %74 = vector.broadcast %73 : vector<8x1xf32> to vector<8x1176xf32>
    %75 = vector.shape_cast %72 : vector<8x1xf32> to vector<8x1xf32>
    %76 = vector.broadcast %75 : vector<8x1xf32> to vector<8x1176xf32>
    %77 = arith.select %22, %74, %76 : vector<8x1176xi1>, vector<8x1176xf32>
    %78 = vector.shape_cast %64 : vector<8x1xf32> to vector<8x1xf32>
    %79 = vector.broadcast %78 : vector<8x1xf32> to vector<8x1176xf32>
    %80 = arith.select %20, %79, %77 : vector<8x1176xi1>, vector<8x1176xf32>
    %cst_24 = arith.constant 0.00255754474 : f32
    %81 = vector.broadcast %cst_24 : f32 to vector<8x1176xf32>
    %82 = arith.mulf %80, %81 : vector<8x1176xf32>
    %83 = math.sqrt %82 : vector<8x1176xf32>
    %cst_25 = arith.constant 9.99999997E-7 : f32
    %84 = vector.broadcast %cst_25 : f32 to vector<8x1176xf32>
    %85 = arith.addf %83, %84 : vector<8x1176xf32>
    %86 = arith.divf %59, %85 : vector<8x1176xf32>
    %c0_26 = arith.constant 0 : index
    %c0_27 = arith.constant 0 : index
    %87 = vector.load %arg7[%c0_26, %c0_27] : memref<8x1176xf32, #tpu.memory_space<vmem>>, vector<8x1176xf32>
    tpu.vector_store %arg7[%c0_26, %c0_27], %86 {strides = array<i32>} : memref<8x1176xf32, #tpu.memory_space<vmem>>, vector<8x1176xf32>,
    %88 = arith.truncf %0 : vector<8x1280xf32> to vector<8x1280xbf16>
    %c0_28 = arith.constant 0 : index
    %c0_29 = arith.constant 0 : index
    %89 = vector.load %arg2[%c0_28, %c0_29] : memref<1280x256xbf16, #tpu.memory_space<vmem>>, vector<1280x256xbf16>
    %cst_30 = arith.constant dense<0.000000e+00> : vector<8x256xf32>
    %90 = tpu.matmul %88, %89, %cst_30 {dimension_numbers = #tpu.dot_dimension_numbers<[1], [0], [0], [1], [0, 0, 1, 1], [], []>} : vector<8x1280xbf16>, vector<1280x256xbf16>, vector<8x256xf32> -> vector<8x256xf32>
    %c0_31 = arith.constant 0 : index
    %c0_32 = arith.constant 0 : index
    %91 = vector.load %arg3[%c0_31, %c0_32] : memref<1x256xf32, #tpu.memory_space<vmem>>, vector<1x256xf32>
    %92 = vector.broadcast %91 : vector<1x256xf32> to vector<8x256xf32>
    %93 = arith.addf %90, %92 : vector<8x256xf32>
    %94 = arith.mulf %93, %93 : vector<8x256xf32>
    %95 = arith.mulf %93, %94 : vector<8x256xf32>
    %cst_33 = arith.constant 4.471500e-02 : f32
    %96 = vector.broadcast %cst_33 : f32 to vector<8x256xf32>
    %97 = arith.mulf %96, %95 : vector<8x256xf32>
    %98 = arith.addf %93, %97 : vector<8x256xf32>
    %cst_34 = arith.constant 0.797884583 : f32
    %99 = vector.broadcast %cst_34 : f32 to vector<8x256xf32>
    %100 = arith.mulf %99, %98 : vector<8x256xf32>
    %101 = math.tanh %100 : vector<8x256xf32>
    %cst_35 = arith.constant 1.000000e+00 : f32
    %102 = vector.broadcast %cst_35 : f32 to vector<8x256xf32>
    %103 = arith.addf %102, %101 : vector<8x256xf32>
    %cst_36 = arith.constant 5.000000e-01 : f32
    %104 = vector.broadcast %cst_36 : f32 to vector<8x256xf32>
    %105 = arith.mulf %104, %103 : vector<8x256xf32>
    %106 = arith.mulf %93, %105 : vector<8x256xf32>
    %107 = arith.truncf %106 : vector<8x256xf32> to vector<8x256xbf16>
    %c0_37 = arith.constant 0 : index
    %c0_38 = arith.constant 0 : index
    %108 = vector.load %arg4[%c0_37, %c0_38] : memref<256x1176xbf16, #tpu.memory_space<vmem>>, vector<256x1176xbf16>
    %cst_39 = arith.constant dense<0.000000e+00> : vector<8x1176xf32>
    %109 = tpu.matmul %107, %108, %cst_39 {dimension_numbers = #tpu.dot_dimension_numbers<[1], [0], [0], [1], [0, 0, 1, 1], [], []>} : vector<8x256xbf16>, vector<256x1176xbf16>, vector<8x1176xf32> -> vector<8x1176xf32>
    %c0_40 = arith.constant 0 : index
    %c0_41 = arith.constant 0 : index
    %110 = vector.load %arg5[%c0_40, %c0_41] : memref<1x1176xf32, #tpu.memory_space<vmem>>, vector<1x1176xf32>
    %111 = vector.broadcast %110 : vector<1x1176xf32> to vector<8x1176xf32>
    %112 = arith.addf %109, %111 : vector<8x1176xf32>
    %113 = arith.truncf %112 : vector<8x1176xf32> to vector<8x1176xbf16>
    %c0_42 = arith.constant 0 : index
    %c0_43 = arith.constant 0 : index
    %114 = vector.load %arg6[%c0_42, %c0_43] : memref<8x1176xbf16, #tpu.memory_space<vmem>>, vector<8x1176xbf16>
    tpu.vector_store %arg6[%c0_42, %c0_43], %113 {strides = array<i32>} : memref<8x1176xbf16, #tpu.memory_space<vmem>>, vector<8x1176xbf16>,
    return
  }
  func.func @transform_0(%arg0: i32) -> (i32, i32) {
    %c0_i32 = arith.constant 0 : i32
    %c0_i32_0 = arith.constant 0 : i32
    return %arg0, %c0_i32 : i32, i32
  }
  func.func @transform_1(%arg0: i32) -> (i32, i32) {
    %c0_i32 = arith.constant 0 : i32
    %c0_i32_0 = arith.constant 0 : i32
    %c0_i32_1 = arith.constant 0 : i32
    return %c0_i32, %c0_i32_0 : i32, i32
  }
  func.func @transform_2(%arg0: i32) -> (i32, i32) {
    %c0_i32 = arith.constant 0 : i32
    %c0_i32_0 = arith.constant 0 : i32
    %c0_i32_1 = arith.constant 0 : i32
    return %c0_i32, %c0_i32_0 : i32, i32
  }
  func.func @transform_3(%arg0: i32) -> (i32, i32) {
    %c0_i32 = arith.constant 0 : i32
    %c0_i32_0 = arith.constant 0 : i32
    %c0_i32_1 = arith.constant 0 : i32
    return %c0_i32, %c0_i32_0 : i32, i32
  }
  func.func @transform_4(%arg0: i32) -> (i32, i32) {
    %c0_i32 = arith.constant 0 : i32
    %c0_i32_0 = arith.constant 0 : i32
    %c0_i32_1 = arith.constant 0 : i32
    return %c0_i32, %c0_i32_0 : i32, i32
  }
  func.func @transform_5(%arg0: i32) -> (i32, i32) {
    %c0_i32 = arith.constant 0 : i32
    %c0_i32_0 = arith.constant 0 : i32
    return %arg0, %c0_i32 : i32, i32
  }
  func.func @transform_6(%arg0: i32) -> (i32, i32) {
    %c0_i32 = arith.constant 0 : i32
    %c0_i32_0 = arith.constant 0 : i32
    return %arg0, %c0_i32 : i32, i32
  }
}

</mosaic_0001>

<bundles_post_ra>
// kernel: tpu_custom_call.1
= control target key start
LH: loop header
LB: loop body
LE: loop exit
PB: predicated region body
PF: predicated region fallthrough
CT: control target
= control target key end

     0   :  { %12 = vsyncpa [#allocation3], 0  ;;  %v34_v63 = vlaneseq  ;;  %s5955_s0 = inlined_call_operand.vmem [shape: f32[8,1280], index: 0, kind: input, shape index: {}]   ;;  %s5956_s1 = inlined_call_operand.vmem [shape: bf16[1280,256], index: 1, kind: input, shape index: {}]   ;;  %s5957_s2 = inlined_call_operand.vmem [shape: f32[1,256], index: 2, kind: input, shape index: {}]   ;;  %s5958_s3 = inlined_call_operand.vmem [shape: bf16[256,1176], index: 3, kind: input, shape index: {}]   ;;  %s5959_s4 = inlined_call_operand.vmem [shape: f32[1,1176], index: 4, kind: input, shape index: {}]   ;;  %s5960_s5 = inlined_call_operand.hbm [shape: bf16[8,1176], index: 5, kind: output, shape index: {0}]   ;;  %s5961_s6 = inlined_call_operand.hbm [shape: f32[8,1176], index: 6, kind: output, shape index: {1}]  }
   0x1   :  { %v3492_v0 = vld [vmem:[%s5956_s1 + $0x4] ss:$8 sps:$4 sm:$0xff]   ;;  %v3494_v1 = vld [vmem:[%s5956_s1] ss:$8 sps:$4 sm:$0xff]   ;;  %v3495_v2 = vld [vmem:[%s5956_s1 + $0x14] ss:$8 sps:$4 sm:$0xff]  }
   0x2   :  { %1600 = vmatprep.subr.bf16.mxu0 %v3492_v0  ;;  %v3497_v3 = vld [vmem:[%s5956_s1 + $0x10] ss:$8 sps:$4 sm:$0xff]   ;;  %v3498_v4 = vld [vmem:[%s5956_s1 + $0x24] ss:$8 sps:$4 sm:$0xff]   ;;  %v3500_v5 = vld [vmem:[%s5956_s1 + $0x20] ss:$8 sps:$4 sm:$0xff]  }
   0x3   :  { %1601 = vmatpush1.bf16.msra.mxu0 %v3494_v1  ;;  %v3501_v6 = vld [vmem:[%s5956_s1 + $0x34] ss:$8 sps:$4 sm:$0xff]   ;;  %v3503_v7 = vld [vmem:[%s5956_s1 + $0x30] ss:$8 sps:$4 sm:$0xff]   ;;  %v3504_v8 = vld [vmem:[%s5956_s1 + $0x44] ss:$8 sps:$4 sm:$0xff]  }
   0x4   :  { %1602 = vmatprep.subr.bf16.mxu0 %v3495_v2  ;;  %v3506_v9 = vld [vmem:[%s5956_s1 + $0x40] ss:$8 sps:$4 sm:$0xff]   ;;  %v3507_v10 = vld [vmem:[%s5956_s1 + $0x54] ss:$8 sps:$4 sm:$0xff]   ;;  %v3509_v11 = vld [vmem:[%s5956_s1 + $0x50] ss:$8 sps:$4 sm:$0xff]  }
   0x5   :  { %v3510_v12 = vld [vmem:[%s5956_s1 + $0x64] ss:$8 sps:$4 sm:$0xff]   ;;  %v3512_v15 = vld [vmem:[%s5956_s1 + $0x60] ss:$8 sps:$4 sm:$0xff]   ;;  %v3513_v16 = vld [vmem:[%s5956_s1 + $0x74] ss:$8 sps:$4 sm:$0xff]  }
   0x6   :  { %v25_v13 = vld [vmem:[%s5955_s0 + $0x8] sm:$0xff]  ;;  %v3515_v17 = vld [vmem:[%s5956_s1 + $0x70] ss:$8 sps:$4 sm:$0xff]   ;;  %v3519_v20 = vld [vmem:[%s5956_s1 + $0x94] ss:$8 sps:$4 sm:$0xff]   ;;  %v4296_v2 = vand.u32 127, %v34_v63 }
   0x7   :  { %1603 = vmatpush1.bf16.msra.mxu0 %v3497_v3  ;;  %v619_v14 = vpack.c.bf16 %v25_v13, %v25_v13  ;;  %v3516_v18 = vld [vmem:[%s5956_s1 + $0x84] ss:$8 sps:$4 sm:$0xff]   ;;  %v3518_v19 = vld [vmem:[%s5956_s1 + $0x80] ss:$8 sps:$4 sm:$0xff]   ;;  %v3521_v21 = vld [vmem:[%s5956_s1 + $0x90] ss:$8 sps:$4 sm:$0xff]  }
   0x8   :  { %1604 = vmatprep.subr.bf16.mxu0 %v3498_v4  ;;  %v3522_v22 = vld [vmem:[%s5956_s1 + $0xa4] ss:$8 sps:$4 sm:$0xff]   ;;  %v3524_v23 = vld [vmem:[%s5956_s1 + $0xa0] ss:$8 sps:$4 sm:$0xff]   ;;  %v3525_v24 = vld [vmem:[%s5956_s1 + $0xb4] ss:$8 sps:$4 sm:$0xff]  }
   0x9   :  { %1632 = vmatprep.mubr.bf16.mxu0 %v619_v14  ;;  %v3527_v25 = vld [vmem:[%s5956_s1 + $0xb0] ss:$8 sps:$4 sm:$0xff]   ;;  %v3528_v26 = vld [vmem:[%s5956_s1 + $0xc4] ss:$8 sps:$4 sm:$0xff]   ;;  %v3530_v27 = vld [vmem:[%s5956_s1 + $0xc0] ss:$8 sps:$4 sm:$0xff]  }
   0xa   :  { %v3531_v28 = vld [vmem:[%s5956_s1 + $0xd4] ss:$8 sps:$4 sm:$0xff]   ;;  %v3533_v29 = vld [vmem:[%s5956_s1 + $0xd0] ss:$8 sps:$4 sm:$0xff]   ;;  %v3534_v30 = vld [vmem:[%s5956_s1 + $0xe4] ss:$8 sps:$4 sm:$0xff]  }
   0xb   :  { %1605 = vmatpush1.bf16.msra.mxu0 %v3500_v5  ;;  %v3536_v31 = vld [vmem:[%s5956_s1 + $0xe0] ss:$8 sps:$4 sm:$0xff]   ;;  %v3537_v32 = vld [vmem:[%s5956_s1 + $0xf4] ss:$8 sps:$4 sm:$0xff]   ;;  %v3539_v33 = vld [vmem:[%s5956_s1 + $0xf0] ss:$8 sps:$4 sm:$0xff]  }
   0xc   :  { %1606 = vmatprep.subr.bf16.mxu0 %v3501_v6  ;;  %v3542_v34 = vld [vmem:[%s5956_s1 + $0x104] ss:$8 sps:$4 sm:$0xff]   ;;  %v27_v36 = vld [vmem:[%s5955_s0 + $0x18] sm:$0xff]  ;;  %v3540_v38 = vld [vmem:[%s5956_s1 + $0x100] ss:$8 sps:$4 sm:$0xff]   ;;  %v36_v5 = vadd.s32 128, %v4296_v2 }
   0xd   :  { %v4210_v35 = vld [vmem:[%s5955_s0] sm:$0xff]  ;;  %v621_v39 = vpack.c.bf16 %v27_v36, %v27_v36  ;;  %v3545_v40 = vld [vmem:[%s5956_s1 + $0x114] ss:$8 sps:$4 sm:$0xff]   ;;  %v3543_v41 = vld [vmem:[%s5956_s1 + $0x110] ss:$8 sps:$4 sm:$0xff]  }
   0xe   :  { %v618_v37 = vpack.c.bf16 %v4210_v35, %v4210_v35  ;;  %v3548_v42 = vld [vmem:[%s5956_s1 + $0x124] ss:$8 sps:$4 sm:$0xff]   ;;  %v3546_v43 = vld [vmem:[%s5956_s1 + $0x120] ss:$8 sps:$4 sm:$0xff]   ;;  %v3551_v44 = vld [vmem:[%s5956_s1 + $0x134] ss:$8 sps:$4 sm:$0xff]  }
   0xf   :  { %1607 = vmatpush1.bf16.msra.mxu0 %v3503_v7  ;;  %v3549_v45 = vld [vmem:[%s5956_s1 + $0x130] ss:$8 sps:$4 sm:$0xff]   ;;  %v3554_v46 = vld [vmem:[%s5956_s1 + $0x144] ss:$8 sps:$4 sm:$0xff]   ;;  %v3552_v47 = vld [vmem:[%s5956_s1 + $0x140] ss:$8 sps:$4 sm:$0xff]  }
  0x10   :  { %1608 = vmatprep.subr.bf16.mxu0 %v3504_v8  ;;  %v3557_v48 = vld [vmem:[%s5956_s1 + $0x154] ss:$8 sps:$4 sm:$0xff]   ;;  %v3555_v49 = vld [vmem:[%s5956_s1 + $0x150] ss:$8 sps:$4 sm:$0xff]   ;;  %v3560_v50 = vld [vmem:[%s5956_s1 + $0x164] ss:$8 sps:$4 sm:$0xff]  }
  0x11   :  { %v3558_v51 = vld [vmem:[%s5956_s1 + $0x160] ss:$8 sps:$4 sm:$0xff]   ;;  %v3563_v52 = vld [vmem:[%s5956_s1 + $0x174] ss:$8 sps:$4 sm:$0xff]   ;;  %v3561_v53 = vld [vmem:[%s5956_s1 + $0x170] ss:$8 sps:$4 sm:$0xff]  }
  0x12   :  { %v3566_v54 = vld [vmem:[%s5956_s1 + $0x184] ss:$8 sps:$4 sm:$0xff]   ;;  %v3564_v55 = vld [vmem:[%s5956_s1 + $0x180] ss:$8 sps:$4 sm:$0xff]   ;;  %v3569_v56 = vld [vmem:[%s5956_s1 + $0x194] ss:$8 sps:$4 sm:$0xff]  }
  0x13   :  { %1609 = vmatpush1.bf16.msra.mxu0 %v3506_v9  ;;  %v3567_v57 = vld [vmem:[%s5956_s1 + $0x190] ss:$8 sps:$4 sm:$0xff]   ;;  %v3572_v58 = vld [vmem:[%s5956_s1 + $0x1a4] ss:$8 sps:$4 sm:$0xff]   ;;  %v3570_v59 = vld [vmem:[%s5956_s1 + $0x1a0] ss:$8 sps:$4 sm:$0xff]  }
  0x14   :  { %1610 = vmatprep.subr.bf16.mxu0 %v3507_v10  ;;  %v3575_v60 = vld [vmem:[%s5956_s1 + $0x1b4] ss:$8 sps:$4 sm:$0xff]   ;;  %v3573_v61 = vld [vmem:[%s5956_s1 + $0x1b0] ss:$8 sps:$4 sm:$0xff]   ;;  %v3578_v62 = vld [vmem:[%s5956_s1 + $0x1c4] ss:$8 sps:$4 sm:$0xff]  }
  0x15   :  { %v3576_v0 = vld [vmem:[%s5956_s1 + $0x1c0] ss:$8 sps:$4 sm:$0xff]   ;;  %v3581_v1 = vld [vmem:[%s5956_s1 + $0x1d4] ss:$8 sps:$4 sm:$0xff]   ;;  %v3579_v3 = vld [vmem:[%s5956_s1 + $0x1d0] ss:$8 sps:$4 sm:$0xff]  }
  0x16   :  { %v3584_v4 = vld [vmem:[%s5956_s1 + $0x1e4] ss:$8 sps:$4 sm:$0xff]   ;;  %v3582_v6 = vld [vmem:[%s5956_s1 + $0x1e0] ss:$8 sps:$4 sm:$0xff]   ;;  %v3587_v7 = vld [vmem:[%s5956_s1 + $0x1f4] ss:$8 sps:$4 sm:$0xff]  }
  0x17   :  { %1611 = vmatpush1.bf16.msra.mxu0 %v3509_v11  ;;  %v3585_v8 = vld [vmem:[%s5956_s1 + $0x1f0] ss:$8 sps:$4 sm:$0xff]   ;;  %v3590_v9 = vld [vmem:[%s5956_s1 + $0x204] ss:$8 sps:$4 sm:$0xff]   ;;  %v4317_v10 = vmul.u32.u64.low 2863311531, %v36_v5  ;;  %v4318_v11 = vmul.u32.u64.high 2863311531, %v36_v5, %v4317_v10 }
  0x18   :  { %1612 = vmatprep.subr.bf16.mxu0 %v3510_v12  ;;  %v4323_v12 = vld [vmem:[%s5955_s0 + $0x10] sm:$0xff]  ;;  %v4328_v13 = vld [vmem:[%s5955_s0 + $0x28] sm:$0xff] }
  0x19   :  { %v3597_v36 = vld [vmem:[%s5956_s1 + $0x230] ss:$8 sps:$4 sm:$0xff]   ;;  %v3612_v10 = vld [vmem:[%s5956_s1 + $0x280] ss:$8 sps:$4 sm:$0xff]  }
  0x1b   :  { %1613 = vmatpush1.bf16.msra.mxu0 %v3512_v15  ;;  %v4331_v14 = vmul.u32.u64.low 2863311531, %v4296_v2  ;;  %v4332_v15 = vmul.u32.u64.high 2863311531, %v4296_v2, %v4331_v14 }
  0x1c   :  { %1614 = vmatprep.subr.bf16.mxu0 %v3513_v16  ;;  %v620_v16 = vpack.c.bf16 %v4323_v12, %v4323_v12 }
  0x1f   :  { %1615 = vmatpush1.bf16.msra.mxu0 %v3515_v17  ;;  %v3588_v17 = vld [vmem:[%s5956_s1 + $0x200] ss:$8 sps:$4 sm:$0xff]  }
  0x20   :  { %1616 = vmatprep.subr.bf16.mxu0 %v3516_v18  ;;  %v623_v18 = vpack.c.bf16 %v4328_v13, %v4328_v13 }
  0x23   :  { %1617 = vmatpush1.bf16.msra.mxu0 %v3518_v19  ;;  %v3593_v19 = vld [vmem:[%s5956_s1 + $0x214] ss:$8 sps:$4 sm:$0xff]  }
  0x24   :  { %1618 = vmatprep.subr.bf16.mxu0 %v3519_v20  ;;  %v62_v20 = vshrl.u32 %v4318_v11, 1  ;;  %v3617_v11 = vld [vmem:[%s5956_s1 + $0x294] ss:$8 sps:$4 sm:$0xff]  }
  0x27   :  { %1619 = vmatpush1.bf16.msra.mxu0 %v3521_v21  ;;  %v3591_v21 = vld [vmem:[%s5956_s1 + $0x210] ss:$8 sps:$4 sm:$0xff]  }
  0x28   :  { %1620 = vmatprep.subr.bf16.mxu0 %v3522_v22  ;;  %v3596_v22 = vld [vmem:[%s5956_s1 + $0x224] ss:$8 sps:$4 sm:$0xff]  }
  0x2b   :  { %1621 = vmatpush1.bf16.msra.mxu0 %v3524_v23  ;;  %v38_v23 = vadd.s32 384, %v4296_v2 }
  0x2c   :  { %1622 = vmatprep.subr.bf16.mxu0 %v3525_v24  ;;  %v51_v24 = vshrl.u32 %v4332_v15, 1 }
  0x2f   :  { %1623 = vmatpush1.bf16.msra.mxu0 %v3527_v25  ;;  %v37_v25 = vadd.s32 256, %v4296_v2 }
  0x30   :  { %1624 = vmatprep.subr.bf16.mxu0 %v3528_v26  ;;  %v63_v26 = vmul.u32 3, %v62_v20 }
  0x33   :  { %1625 = vmatpush1.bf16.msra.mxu0 %v3530_v27  ;;  %v3594_v27 = vld [vmem:[%s5956_s1 + $0x220] ss:$8 sps:$4 sm:$0xff]  }
  0x34   :  { %1626 = vmatprep.subr.bf16.mxu0 %v3531_v28  ;;  %v3599_v28 = vld [vmem:[%s5956_s1 + $0x234] ss:$8 sps:$4 sm:$0xff]  }
  0x37   :  { %1627 = vmatpush1.bf16.msra.mxu0 %v3533_v29 }
  0x38   :  { %1628 = vmatprep.subr.bf16.mxu0 %v3534_v30  ;;  %v4360_v29 = vmul.u32.u64.low 2863311531, %v38_v23  ;;  %v4361_v30 = vmul.u32.u64.high 2863311531, %v38_v23, %v4360_v29 }
  0x3b   :  { %1629 = vmatpush1.bf16.msra.mxu0 %v3536_v31  ;;  %v52_v31 = vmul.u32 3, %v51_v24  ;;  %v3615_v24 = vld [vmem:[%s5956_s1 + $0x290] ss:$8 sps:$4 sm:$0xff]  }
  0x3c   :  { %1630 = vmatprep.subr.bf16.mxu0 %v3537_v32 }
  0x3f   :  { %1631 = vmatpush1.bf16.msra.mxu0 %v3539_v33  ;;  %v4363_v32 = vmul.u32.u64.low 2863311531, %v37_v25  ;;  %v4364_v33 = vmul.u32.u64.high 2863311531, %v37_v25, %v4363_v32 }
  0x40   :  { %1641 = vmatprep.subr.bf16.mxu0 %v3542_v34  ;;  %v64_v34 = vsub.s32 %v36_v5, %v63_v26 }
  0x42   :  { %1633 = vmatmul.mubr.bf16.vlgmr.msra.gmra.mrb[0].mxu0 %v618_v37  ;;  %v3602_v37 = vld [vmem:[%s5956_s1 + $0x244] ss:$8 sps:$4 sm:$0xff]   ;;  %vm156_vm0 = vcmp.ne.s32.totalorder %v64_v34, 0  ;;  %vm166_vm1 = vcmp.lt.s32.totalorder %v64_v34, 0 }
  0x43   :  { %1642 = vmatpush1.bf16.msra.mxu0 %v3540_v38  ;;  %1673 = vmatprep.mubr.bf16.mxu0 %v621_v39  ;;  %v53_v38 = vsub.s32 %v4296_v2, %v52_v31  ;;  %v3600_v39 = vld [vmem:[%s5956_s1 + $0x240] ss:$8 sps:$4 sm:$0xff]   ;;  %vm4383_vm2 = vmand %vm166_vm1, %vm156_vm0 }
  0x44   :  { %1643 = vmatprep.subr.bf16.mxu0 %v3545_v40  ;;  %v3605_v40 = vld [vmem:[%s5956_s1 + $0x254] ss:$8 sps:$4 sm:$0xff]  }
  0x45   :  { %vm155_vm3 = vcmp.ne.s32.totalorder %v53_v38, 0  ;;  %vm165_vm4 = vcmp.lt.s32.totalorder %v53_v38, 0  ;;  %v185_v5 = vadd.s32 3, %v53_v38 }
  0x46   :  { %vm4411_vm5 = vmand %vm165_vm4, %vm155_vm3 }
  0x47   :  { %1644 = vmatpush1.bf16.msra.mxu0 %v3543_v41  ;;  %v4380_v41 = vadd.s32 512, %v4296_v2 }
  0x48   :  { %1645 = vmatprep.subr.bf16.mxu0 %v3548_v42  ;;  %v84_v42 = vshrl.u32 %v4361_v30, 1 }
  0x4b   :  { %1646 = vmatpush1.bf16.msra.mxu0 %v3546_v43  ;;  %v4016_v43 = vld [vmem:[%s5955_s0 + $0x8] sm:$0xff] }
  0x4c   :  { %1647 = vmatprep.subr.bf16.mxu0 %v3551_v44  ;;  %v73_v44 = vshrl.u32 %v4364_v33, 1  ;;  %v3618_v33 = vld [vmem:[%s5956_s1 + $0x2a0] ss:$8 sps:$4 sm:$0xff]  }
  0x4f   :  { %1648 = vmatpush1.bf16.msra.mxu0 %v3549_v45  ;;  %v3603_v45 = vld [vmem:[%s5956_s1 + $0x250] ss:$8 sps:$4 sm:$0xff]  }
  0x50   :  { %1649 = vmatprep.subr.bf16.mxu0 %v3554_v46  ;;  %v3608_v46 = vld [vmem:[%s5956_s1 + $0x264] ss:$8 sps:$4 sm:$0xff]  }
  0x53   :  { %1650 = vmatpush1.bf16.msra.mxu0 %v3552_v47  ;;  %v4395_v47 = vadd.s32 640, %v4296_v2 }
  0x54   :  { %1651 = vmatprep.subr.bf16.mxu0 %v3557_v48 }
  0x57   :  { %1652 = vmatpush1.bf16.msra.mxu0 %v3555_v49  ;;  %v4398_v48 = vmul.u32.u64.low 2863311531, %v4380_v41  ;;  %v4399_v49 = vmul.u32.u64.high 2863311531, %v4380_v41, %v4398_v48 }
  0x58   :  { %1653 = vmatprep.subr.bf16.mxu0 %v3560_v50  ;;  %v4402_v50 = vadd.s32 896, %v4296_v2 }
  0x5b   :  { %1654 = vmatpush1.bf16.msra.mxu0 %v3558_v51  ;;  %v85_v51 = vmul.u32 3, %v84_v42 }
  0x5c   :  { %1655 = vmatprep.subr.bf16.mxu0 %v3563_v52  ;;  %v3606_v52 = vld [vmem:[%s5956_s1 + $0x260] ss:$8 sps:$4 sm:$0xff]  }
  0x5f   :  { %1656 = vmatpush1.bf16.msra.mxu0 %v3561_v53  ;;  %v4408_v53 = vadd.s32 768, %v4296_v2 }
  0x60   :  { %1657 = vmatprep.subr.bf16.mxu0 %v3566_v54  ;;  %v186_v54 = vadd.s32 3, %v64_v34 }
  0x63   :  { %1658 = vmatpush1.bf16.msra.mxu0 %v3564_v55  ;;  %v74_v55 = vmul.u32 3, %v73_v44 }
  0x64   :  { %1659 = vmatprep.subr.bf16.mxu0 %v3569_v56 }
  0x67   :  { %1660 = vmatpush1.bf16.msra.mxu0 %v3567_v57  ;;  %v3611_v57 = vld [vmem:[%s5956_s1 + $0x274] ss:$8 sps:$4 sm:$0xff]  }
  0x68   :  { %1661 = vmatprep.subr.bf16.mxu0 %v3572_v58 }
  0x6b   :  { %1662 = vmatpush1.bf16.msra.mxu0 %v3570_v59  ;;  %v4419_v58 = vmul.u32.u64.low 2863311531, %v4395_v47  ;;  %v4420_v59 = vmul.u32.u64.high 2863311531, %v4395_v47, %v4419_v58 }
  0x6c   :  { %1663 = vmatprep.subr.bf16.mxu0 %v3575_v60 }
  0x6d   :  { %v106_v14 = vshrl.u32 %v4420_v59, 1 }
  0x6f   :  { %1664 = vmatpush1.bf16.msra.mxu0 %v3573_v61  ;;  %v4423_v60 = vmul.u32.u64.low 2863311531, %v4402_v50  ;;  %v4424_v61 = vmul.u32.u64.high 2863311531, %v4402_v50, %v4423_v60  ;;  %v107_v26 = vmul.u32 3, %v106_v14 }
  0x70   :  { %1665 = vmatprep.subr.bf16.mxu0 %v3578_v62  ;;  %v4426_v62 = vsub.s32 %v38_v23, %v85_v51 }
  0x72   :  { %vm158_vm7 = vcmp.ne.s32.totalorder %v4426_v62, 0  ;;  %vm168_vm8 = vcmp.lt.s32.totalorder %v4426_v62, 0 }
  0x73   :  { %1666 = vmatpush1.bf16.msra.mxu0 %v3576_v0  ;;  %vm4479_vm14 = vmand %vm168_vm8, %vm158_vm7 }
  0x74   :  { %1667 = vmatprep.subr.bf16.mxu0 %v3581_v1  ;;  %v4429_v0 = vmul.u32.u64.low 2863311531, %v4408_v53  ;;  %v4430_v1 = vmul.u32.u64.high 2863311531, %v4408_v53, %v4429_v0 }
  0x76   :  { %v117_v20 = vshrl.u32 %v4430_v1, 1 }
  0x77   :  { %1668 = vmatpush1.bf16.msra.mxu0 %v3579_v3  ;;  %v4434_v3 = vsel %vm4383_vm2, %v186_v54, %v64_v34  ;;  %v3623_v34 = vld [vmem:[%s5956_s1 + $0x2b4] ss:$8 sps:$4 sm:$0xff]  }
  0x78   :  { %1669 = vmatprep.subr.bf16.mxu0 %v3584_v4  ;;  %v4436_v4 = vsub.s32 %v37_v25, %v74_v55  ;;  %vm5969_vm6 = vcmp.eq.s32.totalorder %v4434_v3, 1  ;;  %vm5965_vm11 = vcmp.eq.s32.totalorder %v4434_v3, 0  ;;  %v3620_v25 = vld [vmem:[%s5956_s1 + $0x2a4] ss:$8 sps:$4 sm:$0xff]   ;;  %v118_v31 = vmul.u32 3, %v117_v20 }
  0x7a   :  { %vm157_vm9 = vcmp.ne.s32.totalorder %v4436_v4, 0  ;;  %vm167_vm10 = vcmp.lt.s32.totalorder %v4436_v4, 0  ;;  %v119_v42 = vsub.s32 %v4408_v53, %v118_v31 }
  0x7b   :  { %1670 = vmatpush1.bf16.msra.mxu0 %v3582_v6  ;;  %v3609_v6 = vld [vmem:[%s5956_s1 + $0x270] ss:$8 sps:$4 sm:$0xff]   ;;  %vm4466_vm12 = vmand %vm167_vm10, %vm157_vm9 }
  0x7c   :  { %1671 = vmatprep.subr.bf16.mxu0 %v3587_v7  ;;  %v3614_v7 = vld [vmem:[%s5956_s1 + $0x284] ss:$8 sps:$4 sm:$0xff]  }
  0x7f   :  { %1672 = vmatpush1.bf16.msra.mxu0 %v3585_v8  ;;  %v95_v8 = vshrl.u32 %v4399_v49, 1 }
  0x80   :  { %1682 = vmatprep.subr.bf16.mxu0 %v3590_v9  ;;  %v4452_v9 = vsel %vm4411_vm5, %v185_v5, %v53_v38 }
  0x81   :  { %v96_v15 = vmul.u32 3, %v95_v8  ;;  %vm215_vm13 = vcmp.eq.s32.totalorder %v4452_v9, 1  ;;  %vm5968_vm15 = vcmp.eq.s32.totalorder %v4452_v9, 0 }
  0x82   :  { %1674 = vmatmul.mubr.bf16.vlgmr.msra.gmra.mrb[0].mxu0 %v620_v16  ;;  %v128_v16 = vshrl.u32 %v4424_v61, 1 }
  0x83   :  { %1683 = vmatpush1.bf16.msra.mxu0 %v3588_v17  ;;  %1714 = vmatprep.mubr.bf16.mxu0 %v623_v18  ;;  %v4066_v17 = vmov 0.406  }
  0x84   :  { %1684 = vmatprep.subr.bf16.mxu0 %v3593_v19  ;;  %v236_v18 = vsel %vm5969_vm6, 0.456, %v4066_v17  ;;  %v129_v29 = vmul.u32 3, %v128_v16 }
  0x86   :  { %v130_v38 = vsub.s32 %v4402_v50, %v129_v29 }
  0x87   :  { %1685 = vmatpush1.bf16.msra.mxu0 %v3591_v21  ;;  %v4067_v21 = vmov 0.225  }
  0x88   :  { %1686 = vmatprep.subr.bf16.mxu0 %v3596_v22  ;;  %v256_v22 = vsel %vm5969_vm6, 0.224, %v4067_v21  ;;  %v255_v32 = vsel %vm215_vm13, 0.224, %v4067_v21  ;;  %vm162_vm5 = vcmp.ne.s32.totalorder %v130_v38, 0  ;;  %vm172_vm7 = vcmp.lt.s32.totalorder %v130_v38, 0 }
  0x89   :  { %v266_v30 = vsel %vm5965_vm11, 0.229, %v256_v22 }
  0x8a   :  { %v276_v44 = vmul.f32 %v4016_v43, %v266_v30 }
  0x8b   :  { %1687 = vmatpush1.bf16.msra.mxu0 %v3594_v27  ;;  %v246_v27 = vsel %vm5965_vm11, 0.485, %v236_v18 }
  0x8c   :  { %1688 = vmatprep.subr.bf16.mxu0 %v3599_v28  ;;  %v97_v28 = vsub.s32 %v4380_v41, %v96_v15  ;;  %v3621_v41 = vld [vmem:[%s5956_s1 + $0x2b0] ss:$8 sps:$4 sm:$0xff]  }
  0x8e   :  { %vm159_vm0 = vcmp.ne.s32.totalorder %v97_v28, 0  ;;  %vm169_vm1 = vcmp.lt.s32.totalorder %v97_v28, 0  ;;  %v189_v48 = vadd.s32 3, %v97_v28 }
  0x8f   :  { %1689 = vmatpush1.bf16.msra.mxu0 %v3597_v36  ;;  %v108_v36 = vsub.s32 %v4395_v47, %v107_v26  ;;  %vm4523_vm4 = vmand %vm169_vm1, %vm159_vm0 }
  0x90   :  { %1690 = vmatprep.subr.bf16.mxu0 %v3602_v37  ;;  %v187_v37 = vadd.s32 3, %v4436_v4 }
  0x91   :  { %vm160_vm2 = vcmp.ne.s32.totalorder %v108_v36, 0  ;;  %vm170_vm3 = vcmp.lt.s32.totalorder %v108_v36, 0 }
  0x92   :  { %v4531_v50 = vsel %vm4466_vm12, %v187_v37, %v4436_v4 }
  0x93   :  { %1691 = vmatpush1.bf16.msra.mxu0 %v3600_v39  ;;  %v265_v39 = vsel %vm5968_vm15, 0.229, %v255_v32 }
  0x94   :  { %1692 = vmatprep.subr.bf16.mxu0 %v3605_v40  ;;  %v188_v40 = vadd.s32 3, %v4426_v62  ;;  %v275_v49 = vmul.f32 %v265_v39, %v4210_v35 }
  0x97   :  { %1693 = vmatpush1.bf16.msra.mxu0 %v3603_v45  ;;  %v235_v45 = vsel %vm215_vm13, 0.456, %v4066_v17 }
  0x98   :  { %1694 = vmatprep.subr.bf16.mxu0 %v3608_v46  ;;  %v3626_v46 = vld [vmem:[%s5956_s1 + $0x2c4] ss:$8 sps:$4 sm:$0xff]  }
  0x9b   :  { %1695 = vmatpush1.bf16.msra.mxu0 %v3606_v52 }
  0x9c   :  { %1696 = vmatprep.subr.bf16.mxu0 %v3611_v57 }
  0x9f   :  { %1697 = vmatpush1.bf16.msra.mxu0 %v3609_v6 }
  0xa0   :  { %1698 = vmatprep.subr.bf16.mxu0 %v3614_v7 }
  0xa3   :  { %1699 = vmatpush1.bf16.msra.mxu0 %v3612_v10 }
  0xa4   :  { %1700 = vmatprep.subr.bf16.mxu0 %v3617_v11 }
  0xa7   :  { %1701 = vmatpush1.bf16.msra.mxu0 %v3615_v24 }
  0xa8   :  { %1702 = vmatprep.subr.bf16.mxu0 %v3620_v25 }
  0xab   :  { %1703 = vmatpush1.bf16.msra.mxu0 %v3618_v33 }
  0xac   :  { %1704 = vmatprep.subr.bf16.mxu0 %v3623_v34 }
  0xad   :  { %13 = vsyncpa [#allocation5], 0  ;;  %v245_v51 = vsel %vm5968_vm15, 0.485, %v235_v45  ;;  %v4538_v52 = vsel %vm4479_vm14, %v188_v40, %v4426_v62  ;;  %vm161_vm8 = vcmp.ne.s32.totalorder %v119_v42, 0  ;;  %vm171_vm9 = vcmp.lt.s32.totalorder %v119_v42, 0 }
  0xae   :  { %v4540_v35 = vadd.f32 %v276_v44, %v246_v27  ;;  %vm4543_vm10 = vmand %vm170_vm3, %vm160_vm2  ;;  %v190_v54 = vadd.s32 3, %v108_v36  ;;  %vm5964_vm12 = vcmp.eq.s32.totalorder %v4531_v50, 1  ;;  %v3624_v55 = vld [vmem:[%s5956_s1 + $0x2c0] ss:$8 sps:$4 sm:$0xff]   ;;  %v4553_v56 = vsel %vm4523_vm4, %v189_v48, %v97_v28  ;;  %v3629_v61 = vld [vmem:[%s5956_s1 + $0x2d4] ss:$8 sps:$4 sm:$0xff]  }
  0xaf   :  { %1705 = vmatpush1.bf16.msra.mxu0 %v3621_v41  ;;  %vm4555_vm14 = vmand %vm172_vm7, %vm162_vm5  ;;  %v192_v58 = vadd.s32 3, %v130_v38  ;;  %v191_v59 = vadd.s32 3, %v119_v42  ;;  %v4559_v60 = vadd.f32 %v275_v49, %v245_v51  ;;  %vm5966_vm0 = vcmp.eq.s32.totalorder %v4538_v52, 1  ;;  %v3627_v6 = vld [vmem:[%s5956_s1 + $0x2d0] ss:$8 sps:$4 sm:$0xff]  }
  0xb0   :  { %1706 = vmatprep.subr.bf16.mxu0 %v3626_v46  ;;  %vm181_vm1 = vmand %vm171_vm9, %vm161_vm8  ;;  %vm5962_vm2 = vcmp.eq.s32.totalorder %v4434_v3, 2  ;;  %v4571_v62 = vsel %vm5965_vm11, %v4540_v35, 0.0  ;;  %vm5963_vm3 = vcmp.eq.s32.totalorder %v4452_v9, 2  ;;  %vm208_vm4 = vcmp.eq.s32.totalorder %v4538_v52, 0  ;;  %v3632_v16 = vld [vmem:[%s5956_s1 + $0x2e4] ss:$8 sps:$4 sm:$0xff]  }
  0xb1   :  { %vm207_vm5 = vcmp.eq.s32.totalorder %v4531_v50, 0  ;;  %v257_v0 = vsel %vm5964_vm12, 0.224, %v4067_v21  ;;  %v4581_v1 = vsel %vm4543_vm10, %v190_v54, %v108_v36  ;;  %vm5967_vm7 = vcmp.eq.s32.totalorder %v4553_v56, 1  ;;  %v3630_v24 = vld [vmem:[%s5956_s1 + $0x2e0] ss:$8 sps:$4 sm:$0xff]  }
  0xb2   :  { %v238_v4 = vsel %vm5966_vm0, 0.456, %v4066_v17  ;;  %v258_v5 = vsel %vm5966_vm0, 0.224, %v4067_v21  ;;  %v4595_v7 = vsel %vm4555_vm14, %v192_v58, %v130_v38  ;;  %v4597_v8 = vsel %vm181_vm1, %v191_v59, %v119_v42  ;;  %v3635_v25 = vld [vmem:[%s5956_s1 + $0x2f4] ss:$8 sps:$4 sm:$0xff]  }
  0xb3   :  { %1707 = vmatpush1.bf16.msra.mxu0 %v3624_v55  ;;  %v4602_v10 = vsel %vm5969_vm6, %v4540_v35, 0.0  ;;  %v4607_v11 = vsel %vm5962_vm2, %v4540_v35, 0.0  ;;  %v4612_v14 = vsel %vm215_vm13, %v4559_v60, 0.0  ;;  %v4617_v15 = vsel %vm5963_vm3, %v4559_v60, 0.0  ;;  %v3633_v31 = vld [vmem:[%s5956_s1 + $0x2f0] ss:$8 sps:$4 sm:$0xff]  }
  0xb4   :  { %1708 = vmatprep.subr.bf16.mxu0 %v3629_v61  ;;  %v267_v18 = vsel %vm207_vm5, 0.229, %v257_v0  ;;  %vm220_vm8 = vcmp.eq.s32.totalorder %v4581_v1, 1  ;;  %vm209_vm9 = vcmp.eq.s32.totalorder %v4553_v56, 0  ;;  %v259_v19 = vsel %vm5967_vm7, 0.224, %v4067_v21 }
  0xb5   :  { %v248_v20 = vsel %vm208_vm4, 0.485, %v238_v4  ;;  %v268_v22 = vsel %vm208_vm4, 0.229, %v258_v5  ;;  %vm5976_vm10 = vcmp.eq.s32.totalorder %v4595_v7, 1  ;;  %vm221_vm14 = vcmp.eq.s32.totalorder %v4597_v8, 1 }
  0xb6   :  { %v237_v23 = vsel %vm5964_vm12, 0.456, %v4066_v17  ;;  %v277_v26 = vmul.f32 %v267_v18, %v4323_v12  ;;  %vm210_vm1 = vcmp.eq.s32.totalorder %v4581_v1, 0  ;;  %v260_v27 = vsel %vm220_vm8, 0.224, %v4067_v21  ;;  %v28_v36 = vld [vmem:[%s5955_s0 + $0x20] sm:$0xff] }
  0xb7   :  { %1709 = vmatpush1.bf16.msra.mxu0 %v3627_v6  ;;  %v269_v28 = vsel %vm209_vm9, 0.229, %v259_v19  ;;  %vm212_vm2 = vcmp.eq.s32.totalorder %v4595_v7, 0  ;;  %v262_v29 = vsel %vm5976_vm10, 0.224, %v4067_v21  ;;  %vm211_vm3 = vcmp.eq.s32.totalorder %v4597_v8, 0 }
  0xb8   :  { %1710 = vmatprep.subr.bf16.mxu0 %v3632_v16  ;;  %v261_v12 = vsel %vm221_vm14, 0.224, %v4067_v21  ;;  %v247_v30 = vsel %vm207_vm5, 0.485, %v237_v23  ;;  %v239_v32 = vsel %vm5967_vm7, 0.456, %v4066_v17  ;;  %v279_v41 = vmul.f32 %v269_v28, %v28_v36 }
  0xb9   :  { %v240_v33 = vsel %vm220_vm8, 0.456, %v4066_v17  ;;  %v270_v34 = vsel %vm210_vm1, 0.229, %v260_v27  ;;  %v31_v37 = vld [vmem:[%s5955_s0 + $0x38] sm:$0xff]  ;;  %v4688_v44 = vadd.f32 %v277_v26, %v247_v30  ;;  %v622_v51 = vpack.c.bf16 %v28_v36, %v28_v36  ;;  %v4704_v54 = vld [vmem:[%s5955_s0 + $0x30] sm:$0xff] }
  0xba   :  { %v4017_v38 = vld [vmem:[%s5955_s0 + $0x18] sm:$0xff]  ;;  %v3638_v40 = vld [vmem:[%s5956_s1 + $0x304] ss:$8 sps:$4 sm:$0xff]   ;;  %v272_v42 = vsel %vm212_vm2, 0.229, %v262_v29  ;;  %v280_v49 = vmul.f32 %v270_v34, %v4328_v13  ;;  %v625_v53 = vpack.c.bf16 %v31_v37, %v31_v37  ;;  %v44_v59 = vadd.s32 1152, %v4296_v2 }
  0xbb   :  { %1711 = vmatpush1.bf16.msra.mxu0 %v3630_v24  ;;  %v278_v39 = vmul.f32 %v4017_v38, %v268_v22  ;;  %v271_v43 = vsel %vm211_vm3, 0.229, %v261_v12  ;;  %v249_v45 = vsel %vm209_vm9, 0.485, %v239_v32  ;;  %v242_v46 = vsel %vm5976_vm10, 0.456, %v4066_v17 }
  0xbc   :  { %1712 = vmatprep.subr.bf16.mxu0 %v3635_v25  ;;  %v241_v47 = vsel %vm221_vm14, 0.456, %v4066_v17  ;;  %v250_v48 = vsel %vm210_vm1, 0.485, %v240_v33  ;;  %v3636_v55 = vld [vmem:[%s5956_s1 + $0x300] ss:$8 sps:$4 sm:$0xff]   ;;  %v282_v57 = vmul.f32 %v272_v42, %v31_v37  ;;  %v281_v58 = vmul.f32 %v271_v43, %v4704_v54 }
  0xbd   :  { %v43_v61 = vadd.s32 1024, %v4296_v2  ;;  %v4712_v13 = vadd.f32 %v278_v39, %v248_v20  ;;  %v4714_v0 = vadd.f32 %v279_v41, %v249_v45  ;;  %v3641_v4 = vld [vmem:[%s5956_s1 + $0x314] ss:$8 sps:$4 sm:$0xff]   ;;  %v252_v5 = vsel %vm212_vm2, 0.485, %v242_v46 }
  0xbe   :  { %v251_v6 = vsel %vm211_vm3, 0.485, %v241_v47  ;;  %v4723_v16 = vmul.u32.u64.low 2863311531, %v44_v59  ;;  %v4724_v18 = vmul.u32.u64.high 2863311531, %v44_v59, %v4723_v16  ;;  %v4732_v20 = vsel %vm5968_vm15, %v4559_v60, 0.0 }
  0xbf   :  { %1713 = vmatpush1.bf16.msra.mxu0 %v3633_v31  ;;  %v4726_v19 = vmul.u32.u64.low 2863311531, %v43_v61  ;;  %v4727_v2 = vmul.u32.u64.high 2863311531, %v43_v61, %v4726_v19  ;;  %v350_v22 = vadd.f32 %v4607_v11, %v4617_v15  ;;  %v4736_v23 = vadd.f32 %v280_v49, %v250_v48  ;;  %v3732_v25 = vld [vmem:[%s5958_s3 + $0x4] ss:$40 sps:$4 sm:$0xff]   ;;  %v3639_v26 = vld [vmem:[%s5956_s1 + $0x310] ss:$8 sps:$4 sm:$0xff]  }
  0xc0   :  { %1723 = vmatprep.subr.bf16.mxu0 %v3638_v40  ;;  %v320_v24 = vsel %vm5964_vm12, %v4688_v44, 0.0  ;;  %v3644_v11 = vld [vmem:[%s5956_s1 + $0x324] ss:$8 sps:$4 sm:$0xff]   ;;  %v4750_v15 = vadd.f32 %v282_v57, %v252_v5  ;;  %v4752_v27 = vadd.f32 %v281_v58, %v251_v6  ;;  %v328_v28 = vadd.f32 %v4602_v10, %v4612_v14  ;;  %v3734_v29 = vld [vmem:[%s5958_s3] ss:$40 sps:$4 sm:$0xff]   ;;  %2839 = vmatprep.subr.bf16.mxu1 %v3732_v25 }
  0xc1   :  { %v321_v12 = vsel %vm5966_vm0, %v4712_v13, 0.0  ;;  %v322_v30 = vsel %vm5967_vm7, %v4714_v0, 0.0  ;;  %vm5975_vm12 = vcmp.eq.s32.totalorder %v4531_v50, 2  ;;  %vm5973_vm11 = vcmp.eq.s32.totalorder %v4538_v52, 2  ;;  %v3735_v10 = vld [vmem:[%s5958_s3 + $0x54] ss:$40 sps:$4 sm:$0xff]   ;;  %2840 = vmatpush1.bf16.msra.mxu1 %v3734_v29 }
  0xc2   :  { %1715 = vmatmul.mubr.bf16.vlgmr.msra.gmra.mrb[0].mxu0 %v622_v51  ;;  %v150_v14 = vshrl.u32 %v4724_v18, 1  ;;  %v139_v31 = vshrl.u32 %v4727_v2, 1  ;;  %v329_v32 = vadd.f32 %v328_v28, %v320_v24  ;;  %vm5971_vm0 = vcmp.eq.s32.totalorder %v4553_v56, 2  ;;  %v3737_v33 = vld [vmem:[%s5958_s3 + $0x50] ss:$40 sps:$4 sm:$0xff]   ;;  %2841 = vmatprep.subr.bf16.mxu1 %v3735_v10 }
  0xc3   :  { %1724 = vmatpush1.bf16.msra.mxu0 %v3636_v55  ;;  %1755 = vmatprep.mubr.bf16.mxu0 %v625_v53  ;;  %vm5970_vm7 = vcmp.eq.s32.totalorder %v4581_v1, 2  ;;  %vm5972_vm15 = vcmp.eq.s32.totalorder %v4597_v8, 2  ;;  %vm5974_vm6 = vcmp.eq.s32.totalorder %v4595_v7, 2  ;;  %v342_v34 = vsel %vm5975_vm12, %v4688_v44, 0.0  ;;  %v3738_v36 = vld [vmem:[%s5958_s3 + $0xa4] ss:$40 sps:$4 sm:$0xff]  }
  0xc4   :  { %1725 = vmatprep.subr.bf16.mxu0 %v3641_v4  ;;  %v3642_v37 = vld [vmem:[%s5956_s1 + $0x320] ss:$8 sps:$4 sm:$0xff]   ;;  %v151_v38 = vmul.u32 3, %v150_v14  ;;  %v140_v39 = vmul.u32 3, %v139_v31  ;;  %v330_v40 = vadd.f32 %v329_v32, %v321_v12  ;;  %v343_v41 = vsel %vm5973_vm11, %v4712_v13, 0.0 }
  0xc5   :  { %v3647_v42 = vld [vmem:[%s5956_s1 + $0x334] ss:$8 sps:$4 sm:$0xff]   ;;  %v323_v43 = vsel %vm220_vm8, %v4736_v23, 0.0  ;;  %v324_v45 = vsel %vm221_vm14, %v4752_v27, 0.0  ;;  %v4803_v46 = vsel %vm5976_vm10, %v4750_v15, 0.0  ;;  %v351_v47 = vadd.f32 %v350_v22, %v342_v34  ;;  %2842 = vmatpush1.bf16.msra.mxu1 %v3737_v33  ;;  %v4855_v12 = vld [vmem:[%s5955_s0 + $0x48] sm:$0xff] }
  0xc6   :  { %v152_v48 = vsub.s32 %v44_v59, %v151_v38  ;;  %v141_v49 = vsub.s32 %v43_v61, %v140_v39  ;;  %v331_v51 = vadd.f32 %v330_v40, %v322_v30  ;;  %v344_v53 = vsel %vm5971_vm0, %v4714_v0, 0.0  ;;  %v3740_v55 = vld [vmem:[%s5958_s3 + $0xa0] ss:$40 sps:$4 sm:$0xff]   ;;  %2843 = vmatprep.subr.bf16.mxu1 %v3738_v36  ;;  %v3741_v4 = vld [vmem:[%s5958_s3 + $0xf4] ss:$40 sps:$4 sm:$0xff]  }
  0xc7   :  { %1726 = vmatpush1.bf16.msra.mxu0 %v3639_v26  ;;  %v345_v57 = vsel %vm5970_vm7, %v4736_v23, 0.0  ;;  %v4817_v58 = vsel %vm5972_vm15, %v4752_v27, 0.0  ;;  %v4822_v59 = vsel %vm5974_vm6, %v4750_v15, 0.0  ;;  %v352_v61 = vadd.f32 %v351_v47, %v343_v41  ;;  %v3645_v5 = vld [vmem:[%s5956_s1 + $0x330] ss:$8 sps:$4 sm:$0xff]   ;;  %v4873_v31 = vld [vmem:[%s5955_s0 + $0x40] sm:$0xff] }
  0xc8   :  { %1727 = vmatprep.subr.bf16.mxu0 %v3644_v11  ;;  %vm164_vm7 = vcmp.ne.s32.totalorder %v152_v48, 0  ;;  %vm174_vm0 = vcmp.lt.s32.totalorder %v152_v48, 0  ;;  %v194_v6 = vadd.s32 3, %v152_v48  ;;  %vm163_vm15 = vcmp.ne.s32.totalorder %v141_v49, 0  ;;  %v3650_v16 = vld [vmem:[%s5956_s1 + $0x344] ss:$8 sps:$4 sm:$0xff]  }
  0xc9   :  { %vm5979_vm11 = vcmask 195584   ;;  %vm184_vm6 = vmand %vm174_vm0, %vm164_vm7  ;;  %vm173_vm12 = vcmp.lt.s32.totalorder %v141_v49, 0  ;;  %v193_v18 = vadd.s32 3, %v141_v49  ;;  %v332_v19 = vadd.f32 %v331_v51, %v323_v43  ;;  %v3648_v22 = vld [vmem:[%s5956_s1 + $0x340] ss:$8 sps:$4 sm:$0xff]   ;;  %2844 = vmatpush1.bf16.msra.mxu1 %v3740_v55 }
  0xca   :  { %v297_v2 = vsel %vm207_vm5, %v4688_v44, 0.0  ;;  %v4839_v24 = vsel %vm184_vm6, %v194_v6, %v152_v48  ;;  %vm183_vm10 = vmand %vm173_vm12, %vm163_vm15  ;;  %v353_v25 = vadd.f32 %v352_v61, %v344_v53  ;;  %v298_v26 = vsel %vm208_vm4, %v4712_v13, 0.0  ;;  %v3743_v28 = vld [vmem:[%s5958_s3 + $0xf0] ss:$40 sps:$4 sm:$0xff]   ;;  %v3653_v29 = vld [vmem:[%s5956_s1 + $0x354] ss:$8 sps:$4 sm:$0xff]   ;;  %2845 = vmatprep.subr.bf16.mxu1 %v3741_v4 }
  0xcb   :  { %1728 = vmatpush1.bf16.msra.mxu0 %v3642_v37  ;;  %v305_v11 = vadd.f32 %v4571_v62, %v4732_v20  ;;  %vm5980_vm6 = vcmp.eq.s32.totalorder %v4839_v24, 0  ;;  %vm224_vm15 = vcmp.eq.s32.totalorder %v4839_v24, 1  ;;  %v4859_v30 = vsel %vm183_vm10, %v193_v18, %v141_v49  ;;  %v3744_v20 = vld [vmem:[%s5958_s3 + $0x144] ss:$40 sps:$4 sm:$0xff]   ;;  %v3746_v39 = vld [vmem:[%s5958_s3 + $0x140] ss:$40 sps:$4 sm:$0xff]  }
  0xcc   :  { %1729 = vmatprep.subr.bf16.mxu0 %v3647_v42  ;;  %v333_v62 = vadd.f32 %v332_v19, %v324_v45  ;;  %v244_v10 = vsel %vm224_vm15, 0.456, %v4066_v17  ;;  %v264_v14 = vsel %vm224_vm15, 0.224, %v4067_v21  ;;  %vm5981_vm12 = vcmp.eq.s32.totalorder %v4859_v30, 0 }
  0xcd   :  { %vm223_vm0 = vcmp.eq.s32.totalorder %v4859_v30, 1  ;;  %v254_v32 = vsel %vm5980_vm6, 0.485, %v244_v10  ;;  %v274_v33 = vsel %vm5980_vm6, 0.229, %v264_v14  ;;  %2846 = vmatpush1.bf16.msra.mxu1 %v3743_v28  ;;  %vm5978_vm7 = vcmp.eq.s32.totalorder %v4839_v24, 2 }
  0xce   :  { %v263_v34 = vsel %vm223_vm0, 0.224, %v4067_v21  ;;  %v284_v36 = vmul.f32 %v274_v33, %v4855_v12  ;;  %v243_v38 = vsel %vm223_vm0, 0.456, %v4066_v17  ;;  %v354_v21 = vadd.f32 %v353_v25, %v345_v57  ;;  %2847 = vmatprep.subr.bf16.mxu1 %v3744_v20  ;;  %v3747_v42 = vld [vmem:[%s5958_s3 + $0x194] ss:$40 sps:$4 sm:$0xff]  }
  0xcf   :  { %1730 = vmatpush1.bf16.msra.mxu0 %v3645_v5  ;;  %v273_v37 = vsel %vm5981_vm12, 0.229, %v263_v34  ;;  %v253_v41 = vsel %vm5981_vm12, 0.485, %v243_v38  ;;  %v3651_v17 = vld [vmem:[%s5956_s1 + $0x350] ss:$8 sps:$4 sm:$0xff]   ;;  %v334_v45 = vadd.f32 %v333_v62, %v4803_v46  ;;  %v306_v47 = vadd.f32 %v305_v11, %v297_v2 }
  0xd0   :  { %1731 = vmatprep.subr.bf16.mxu0 %v3650_v16  ;;  %v283_v40 = vmul.f32 %v273_v37, %v4873_v31  ;;  %v4903_v43 = vadd.f32 %v284_v36, %v254_v32  ;;  %vm5977_vm10 = vcmp.eq.s32.totalorder %v4859_v30, 2  ;;  %v3656_v48 = vld [vmem:[%s5956_s1 + $0x364] ss:$8 sps:$4 sm:$0xff]   ;;  %v355_v51 = vadd.f32 %v354_v21, %v4817_v58  ;;  %v3749_v58 = vld [vmem:[%s5958_s3 + $0x190] ss:$40 sps:$4 sm:$0xff]  }
  0xd1   :  { %v299_v53 = vsel %vm209_vm9, %v4714_v0, 0.0  ;;  %v300_v57 = vsel %vm210_vm1, %v4736_v23, 0.0  ;;  %v307_v61 = vadd.f32 %v306_v47, %v298_v26  ;;  %2848 = vmatpush1.bf16.msra.mxu1 %v3746_v39  ;;  %v3750_v18 = vld [vmem:[%s5958_s3 + $0x1e4] ss:$40 sps:$4 sm:$0xff]   ;;  %v3654_v19 = vld [vmem:[%s5956_s1 + $0x360] ss:$8 sps:$4 sm:$0xff]  }
  0xd2   :  { %v4910_v49 = vadd.f32 %v283_v40, %v253_v41  ;;  %v327_v46 = vsel %vm224_vm15, %v4903_v43, 0.0  ;;  %v349_v55 = vsel %vm5978_vm7, %v4903_v43, 0.0  ;;  %v356_v16 = vadd.f32 %v355_v51, %v4822_v59  ;;  %2849 = vmatprep.subr.bf16.mxu1 %v3747_v42  ;;  %v3659_v25 = vld [vmem:[%s5956_s1 + $0x374] ss:$8 sps:$4 sm:$0xff]   ;;  %v3752_v62 = vld [vmem:[%s5958_s3 + $0x1e0] ss:$40 sps:$4 sm:$0xff]  }
  0xd3   :  { %1732 = vmatpush1.bf16.msra.mxu0 %v3648_v22  ;;  %v336_v5 = vsel %vm5979_vm11, %v327_v46, 0.0  ;;  %v308_v22 = vadd.f32 %v307_v61, %v299_v53  ;;  %v358_v59 = vsel %vm5979_vm11, %v349_v55, 0.0  ;;  %v301_v11 = vsel %vm211_vm3, %v4752_v27, 0.0  ;;  %v3753_v10 = vld [vmem:[%s5958_s3 + $0x234] ss:$40 sps:$4 sm:$0xff]  }
  0xd4   :  { %1733 = vmatprep.subr.bf16.mxu0 %v3653_v29  ;;  %v326_v4 = vsel %vm223_vm0, %v4910_v49, 0.0  ;;  %v348_v6 = vsel %vm5977_vm10, %v4910_v49, 0.0  ;;  %v302_v20 = vsel %vm212_vm2, %v4750_v15, 0.0  ;;  %v3657_v14 = vld [vmem:[%s5956_s1 + $0x370] ss:$8 sps:$4 sm:$0xff]   ;;  %v304_v33 = vsel %vm5980_vm6, %v4903_v43, 0.0 }
  0xd5   :  { %v335_v2 = vadd.f32 %v334_v45, %v326_v4  ;;  %v357_v26 = vadd.f32 %v356_v16, %v348_v6  ;;  %v309_v29 = vadd.f32 %v308_v22, %v300_v57  ;;  %2850 = vmatpush1.bf16.msra.mxu1 %v3749_v58  ;;  %v3662_v36 = vld [vmem:[%s5956_s1 + $0x384] ss:$8 sps:$4 sm:$0xff]   ;;  %v303_v37 = vsel %vm5981_vm12, %v4910_v49, 0.0  ;;  %v3755_v39 = vld [vmem:[%s5958_s3 + $0x230] ss:$40 sps:$4 sm:$0xff]  }
  0xd6   :  { %2851 = vmatprep.subr.bf16.mxu1 %v3750_v18  ;;  %v314_v40 = vsel %vm5979_vm11, %v304_v33, 0.0  ;;  %v3660_v41 = vld [vmem:[%s5956_s1 + $0x380] ss:$8 sps:$4 sm:$0xff]   ;;  %v3665_v42 = vld [vmem:[%s5956_s1 + $0x394] ss:$8 sps:$4 sm:$0xff]   ;;  %v624_v18 = vpack.c.bf16 %v4704_v54, %v4704_v54  ;;  %vm5996_vm10 = vcmp.eq.s32.totalorder %v4434_v3, 1 }
  0xd7   :  { %1734 = vmatpush1.bf16.msra.mxu0 %v3651_v17  ;;  %v337_v28 = vadd.f32 %v336_v5, %v335_v2  ;;  %v359_v32 = vadd.f32 %v358_v59, %v357_v26  ;;  %v310_v34 = vadd.f32 %v309_v29, %v301_v11  ;;  %v3663_v45 = vld [vmem:[%s5956_s1 + $0x390] ss:$8 sps:$4 sm:$0xff]   ;;  %v3668_v47 = vld [vmem:[%s5956_s1 + $0x3a4] ss:$8 sps:$4 sm:$0xff]   ;;  %v3671_v51 = vld [vmem:[%s5956_s1 + $0x3b4] ss:$8 sps:$4 sm:$0xff]   ;;  %v627_v2 = vpack.c.bf16 %v4855_v12, %v4855_v12 }
  0xd8   :  { %1735 = vmatprep.subr.bf16.mxu0 %v3656_v48  ;;  %v3666_v48 = vld [vmem:[%s5956_s1 + $0x3a0] ss:$8 sps:$4 sm:$0xff]   ;;  %v3669_v53 = vld [vmem:[%s5956_s1 + $0x3b0] ss:$8 sps:$4 sm:$0xff]   ;;  %v3674_v46 = vld [vmem:[%s5956_s1 + $0x3c4] ss:$8 sps:$4 sm:$0xff]  }
  0xd9   :  { %338 = vadd.xlane.f32.xlu0 %v337_v28  ;;  %v311_v38 = vadd.f32 %v310_v34, %v302_v20  ;;  %2852 = vmatpush1.bf16.msra.mxu1 %v3752_v62  ;;  %v3672_v55 = vld [vmem:[%s5956_s1 + $0x3c0] ss:$8 sps:$4 sm:$0xff]   ;;  %v3677_v57 = vld [vmem:[%s5956_s1 + $0x3d4] ss:$8 sps:$4 sm:$0xff]   ;;  %v3675_v61 = vld [vmem:[%s5956_s1 + $0x3d0] ss:$8 sps:$4 sm:$0xff]  }
  0xda   :  { %2853 = vmatprep.subr.bf16.mxu1 %v3753_v10  ;;  %v3680_v58 = vld [vmem:[%s5956_s1 + $0x3e4] ss:$8 sps:$4 sm:$0xff]   ;;  %v3678_v4 = vld [vmem:[%s5956_s1 + $0x3e0] ss:$8 sps:$4 sm:$0xff]   ;;  %v3683_v5 = vld [vmem:[%s5956_s1 + $0x3f4] ss:$8 sps:$4 sm:$0xff]  }
  0xdb   :  { %1736 = vmatpush1.bf16.msra.mxu0 %v3654_v19  ;;  %v312_v21 = vadd.f32 %v311_v38, %v303_v37  ;;  %v3681_v6 = vld [vmem:[%s5956_s1 + $0x3f0] ss:$8 sps:$4 sm:$0xff]   ;;  %v3686_v16 = vld [vmem:[%s5956_s1 + $0x404] ss:$8 sps:$4 sm:$0xff]   ;;  %v3684_v19 = vld [vmem:[%s5956_s1 + $0x400] ss:$8 sps:$4 sm:$0xff]  }
  0xdc   :  { %1737 = vmatprep.subr.bf16.mxu0 %v3659_v25  ;;  %v3689_v22 = vld [vmem:[%s5956_s1 + $0x414] ss:$8 sps:$4 sm:$0xff]   ;;  %v3687_v25 = vld [vmem:[%s5956_s1 + $0x410] ss:$8 sps:$4 sm:$0xff]   ;;  %v3692_v54 = vld [vmem:[%s5956_s1 + $0x424] ss:$8 sps:$4 sm:$0xff]  }
  0xdd   :  { %360 = vadd.xlane.f32.xlu0 %v359_v32  ;;  %v315_v17 = vadd.f32 %v314_v40, %v312_v21  ;;  %2854 = vmatpush1.bf16.msra.mxu1 %v3755_v39  ;;  %v3690_v12 = vld [vmem:[%s5956_s1 + $0x420] ss:$8 sps:$4 sm:$0xff]   ;;  %v3695_v26 = vld [vmem:[%s5956_s1 + $0x434] ss:$8 sps:$4 sm:$0xff]   ;;  %v3693_v59 = vld [vmem:[%s5956_s1 + $0x430] ss:$8 sps:$4 sm:$0xff]  }
  0xde   :  { %v3698_v11 = vld [vmem:[%s5956_s1 + $0x444] ss:$8 sps:$4 sm:$0xff]   ;;  %v3696_v28 = vld [vmem:[%s5956_s1 + $0x440] ss:$8 sps:$4 sm:$0xff]   ;;  %v3701_v29 = vld [vmem:[%s5956_s1 + $0x454] ss:$8 sps:$4 sm:$0xff]  }
  0xdf   :  { %1738 = vmatpush1.bf16.msra.mxu0 %v3657_v14  ;;  %316 = vadd.xlane.f32.xlu1 %v315_v17  ;;  %v3699_v62 = vld [vmem:[%s5956_s1 + $0x450] ss:$8 sps:$4 sm:$0xff]   ;;  %v3704_v20 = vld [vmem:[%s5956_s1 + $0x464] ss:$8 sps:$4 sm:$0xff]   ;;  %v3702_v10 = vld [vmem:[%s5956_s1 + $0x460] ss:$8 sps:$4 sm:$0xff]  }
  0xe0   :  { %1739 = vmatprep.subr.bf16.mxu0 %v3662_v36  ;;  %v3707_v14 = vld [vmem:[%s5956_s1 + $0x474] ss:$8 sps:$4 sm:$0xff]   ;;  %v3705_v32 = vld [vmem:[%s5956_s1 + $0x470] ss:$8 sps:$4 sm:$0xff]   ;;  %v3710_v33 = vld [vmem:[%s5956_s1 + $0x484] ss:$8 sps:$4 sm:$0xff]  }
  0xe1   :  { %v3708_v34 = vld [vmem:[%s5956_s1 + $0x480] ss:$8 sps:$4 sm:$0xff]   ;;  %v3713_v36 = vld [vmem:[%s5956_s1 + $0x494] ss:$8 sps:$4 sm:$0xff]   ;;  %v3711_v37 = vld [vmem:[%s5956_s1 + $0x490] ss:$8 sps:$4 sm:$0xff]  }
  0xe2   :  { %v3716_v38 = vld [vmem:[%s5956_s1 + $0x4a4] ss:$8 sps:$4 sm:$0xff]   ;;  %v3714_v39 = vld [vmem:[%s5956_s1 + $0x4a0] ss:$8 sps:$4 sm:$0xff]   ;;  %v3719_v40 = vld [vmem:[%s5956_s1 + $0x4b4] ss:$8 sps:$4 sm:$0xff]  }
  0xe3   :  { %1740 = vmatpush1.bf16.msra.mxu0 %v3660_v41  ;;  %v3717_v41 = vld [vmem:[%s5956_s1 + $0x4b0] ss:$8 sps:$4 sm:$0xff]   ;;  %v3722_v21 = vld [vmem:[%s5956_s1 + $0x4c4] ss:$8 sps:$4 sm:$0xff]   ;;  %v3725_v17 = vld [vmem:[%s5956_s1 + $0x4d4] ss:$8 sps:$4 sm:$0xff]  }
  0xe4   :  { %1741 = vmatprep.subr.bf16.mxu0 %v3665_v42  ;;  %v3720_v42 = vld [vmem:[%s5956_s1 + $0x4c0] ss:$8 sps:$4 sm:$0xff]   ;;  %vm5997_vm7 = vcmp.eq.s32.totalorder %v4452_v9, 0  ;;  %vm5998_vm11 = vcmp.eq.s32.totalorder %v4434_v3, 0  ;;  %vm5999_vm6 = vcmp.eq.s32.totalorder %v4531_v50, 1  ;;  %vm6000_vm12 = vcmp.eq.s32.totalorder %v4538_v52, 1 }
  0xe7   :  { %1742 = vmatpush1.bf16.msra.mxu0 %v3663_v45  ;;  %v3723_v45 = vld [vmem:[%s5956_s1 + $0x4d0] ss:$8 sps:$4 sm:$0xff]  }
  0xe8   :  { %1743 = vmatprep.subr.bf16.mxu0 %v3668_v47  ;;  %v3728_v47 = vld [vmem:[%s5956_s1 + $0x4e4] ss:$8 sps:$4 sm:$0xff]  }
  0xeb   :  { %1744 = vmatpush1.bf16.msra.mxu0 %v3666_v48  ;;  %v3726_v48 = vld [vmem:[%s5956_s1 + $0x4e0] ss:$8 sps:$4 sm:$0xff]  }
  0xec   :  { %1745 = vmatprep.subr.bf16.mxu0 %v3671_v51  ;;  %v3731_v51 = vld [vmem:[%s5956_s1 + $0x4f4] ss:$8 sps:$4 sm:$0xff]  }
  0xef   :  { %1746 = vmatpush1.bf16.msra.mxu0 %v3669_v53  ;;  %v3729_v53 = vld [vmem:[%s5956_s1 + $0x4f0] ss:$8 sps:$4 sm:$0xff]  }
  0xf0   :  { %1747 = vmatprep.subr.bf16.mxu0 %v3674_v46  ;;  %v626_v46 = vpack.c.bf16 %v4873_v31, %v4873_v31  ;;  %v3761_v31 = vld [vmem:[%s5958_s3 + $0x2d0] ss:$40 sps:$4 sm:$0xff]  }
  0xf3   :  { %1748 = vmatpush1.bf16.msra.mxu0 %v3672_v55  ;;  %v3756_v55 = vld [vmem:[%s5958_s3 + $0x284] ss:$40 sps:$4 sm:$0xff]  }
  0xf4   :  { %1749 = vmatprep.subr.bf16.mxu0 %v3677_v57  ;;  %v3758_v57 = vld [vmem:[%s5958_s3 + $0x280] ss:$40 sps:$4 sm:$0xff]   ;;  %2855 = vmatprep.subr.bf16.mxu1 %v3756_v55 }
  0xf5   :  { %2856 = vmatpush1.bf16.msra.mxu1 %v3758_v57 }
  0xf7   :  { %1750 = vmatpush1.bf16.msra.mxu0 %v3675_v61  ;;  %v3759_v61 = vld [vmem:[%s5958_s3 + $0x2d4] ss:$40 sps:$4 sm:$0xff]  }
  0xf8   :  { %1751 = vmatprep.subr.bf16.mxu0 %v3680_v58  ;;  %2857 = vmatprep.subr.bf16.mxu1 %v3759_v61  ;;  %v3762_v58 = vld [vmem:[%s5958_s3 + $0x324] ss:$40 sps:$4 sm:$0xff]  }
  0xf9   :  { %2858 = vmatpush1.bf16.msra.mxu1 %v3761_v31 }
  0xfa   :  { %2859 = vmatprep.subr.bf16.mxu1 %v3762_v58 }
  0xfb   :  { %1752 = vmatpush1.bf16.msra.mxu0 %v3678_v4  ;;  %v3764_v4 = vld [vmem:[%s5958_s3 + $0x320] ss:$40 sps:$4 sm:$0xff]  }
  0xfc   :  { %1753 = vmatprep.subr.bf16.mxu0 %v3683_v5  ;;  %v3765_v5 = vld [vmem:[%s5958_s3 + $0x374] ss:$40 sps:$4 sm:$0xff]  }
  0xfd   :  { %2860 = vmatpush1.bf16.msra.mxu1 %v3764_v4 }
  0xfe   :  { %2861 = vmatprep.subr.bf16.mxu1 %v3765_v5 }
  0xff   :  { %1754 = vmatpush1.bf16.msra.mxu0 %v3681_v6  ;;  %v3767_v6 = vld [vmem:[%s5958_s3 + $0x370] ss:$40 sps:$4 sm:$0xff]  }
 0x100   :  { %1764 = vmatprep.subr.bf16.mxu0 %v3686_v16  ;;  %v3768_v16 = vld [vmem:[%s5958_s3 + $0x3c4] ss:$40 sps:$4 sm:$0xff]  }
 0x101   :  { %2862 = vmatpush1.bf16.msra.mxu1 %v3767_v6 }
 0x102   :  { %1756 = vmatmul.mubr.bf16.vlgmr.msra.gmra.mrb[0].mxu0 %v624_v18  ;;  %v3770_v18 = vld [vmem:[%s5958_s3 + $0x3c0] ss:$40 sps:$4 sm:$0xff]   ;;  %2863 = vmatprep.subr.bf16.mxu1 %v3768_v16 }
 0x103   :  { %1765 = vmatpush1.bf16.msra.mxu0 %v3684_v19  ;;  %1796 = vmatprep.mubr.bf16.mxu0 %v627_v2  ;;  %v3771_v19 = vld [vmem:[%s5958_s3 + $0x414] ss:$40 sps:$4 sm:$0xff]   ;;  %v3773_v2 = vld [vmem:[%s5958_s3 + $0x410] ss:$40 sps:$4 sm:$0xff]  }
 0x104   :  { %1766 = vmatprep.subr.bf16.mxu0 %v3689_v22  ;;  %v3774_v22 = vld [vmem:[%s5958_s3 + $0x464] ss:$40 sps:$4 sm:$0xff]  }
 0x105   :  { %2864 = vmatpush1.bf16.msra.mxu1 %v3770_v18 }
 0x106   :  { %2865 = vmatprep.subr.bf16.mxu1 %v3771_v19 }
 0x107   :  { %1767 = vmatpush1.bf16.msra.mxu0 %v3687_v25  ;;  %v3776_v25 = vld [vmem:[%s5958_s3 + $0x460] ss:$40 sps:$4 sm:$0xff]  }
 0x108   :  { %1768 = vmatprep.subr.bf16.mxu0 %v3692_v54  ;;  %v3777_v54 = vld [vmem:[%s5958_s3 + $0x4b4] ss:$40 sps:$4 sm:$0xff]  }
 0x109   :  { %2866 = vmatpush1.bf16.msra.mxu1 %v3773_v2 }
 0x10a   :  { %2867 = vmatprep.subr.bf16.mxu1 %v3774_v22 }
 0x10b   :  { %1769 = vmatpush1.bf16.msra.mxu0 %v3690_v12  ;;  %v3779_v12 = vld [vmem:[%s5958_s3 + $0x4b0] ss:$40 sps:$4 sm:$0xff]  }
 0x10c   :  { %1770 = vmatprep.subr.bf16.mxu0 %v3695_v26  ;;  %v3782_v26 = vld [vmem:[%s5958_s3 + $0xc] ss:$40 sps:$4 sm:$0xff]  }
 0x10d   :  { %2868 = vmatpush1.bf16.msra.mxu1 %v3776_v25 }
 0x10e   :  { %2869 = vmatprep.subr.bf16.mxu1 %v3777_v54 }
 0x10f   :  { %1771 = vmatpush1.bf16.msra.mxu0 %v3693_v59 }
 0x110   :  { %1772 = vmatprep.subr.bf16.mxu0 %v3698_v11 }
 0x111   :  { %2870 = vmatpush1.bf16.msra.mxu1 %v3779_v12 }
 0x112   :  { %2880 = vmatprep.subr.bf16.mxu1 %v3782_v26 }
 0x113   :  { %1773 = vmatpush1.bf16.msra.mxu0 %v3696_v28 }
 0x114   :  { %1774 = vmatprep.subr.bf16.mxu0 %v3701_v29 }
 0x117   :  { %1775 = vmatpush1.bf16.msra.mxu0 %v3699_v62 }
 0x118   :  { %1776 = vmatprep.subr.bf16.mxu0 %v3704_v20 }
 0x11b   :  { %1777 = vmatpush1.bf16.msra.mxu0 %v3702_v10 }
 0x11c   :  { %1778 = vmatprep.subr.bf16.mxu0 %v3707_v14 }
 0x11f   :  { %1779 = vmatpush1.bf16.msra.mxu0 %v3705_v32 }
 0x120   :  { %1780 = vmatprep.subr.bf16.mxu0 %v3710_v33 }
 0x123   :  { %1781 = vmatpush1.bf16.msra.mxu0 %v3708_v34 }
 0x124   :  { %1782 = vmatprep.subr.bf16.mxu0 %v3713_v36 }
 0x127   :  { %1783 = vmatpush1.bf16.msra.mxu0 %v3711_v37 }
 0x128   :  { %1784 = vmatprep.subr.bf16.mxu0 %v3716_v38 }
 0x12b   :  { %1785 = vmatpush1.bf16.msra.mxu0 %v3714_v39 }
 0x12c   :  { %1786 = vmatprep.subr.bf16.mxu0 %v3719_v40 }
 0x12f   :  { %1787 = vmatpush1.bf16.msra.mxu0 %v3717_v41 }
 0x130   :  { %1788 = vmatprep.subr.bf16.mxu0 %v3722_v21 }
 0x133   :  { %1789 = vmatpush1.bf16.msra.mxu0 %v3720_v42 }
 0x134   :  { %1790 = vmatprep.subr.bf16.mxu0 %v3725_v17 }
 0x137   :  { %1791 = vmatpush1.bf16.msra.mxu0 %v3723_v45 }
 0x138   :  { %1792 = vmatprep.subr.bf16.mxu0 %v3728_v47 }
 0x13b   :  { %1793 = vmatpush1.bf16.msra.mxu0 %v3726_v48 }
 0x13c   :  { %1794 = vmatprep.subr.bf16.mxu0 %v3731_v51 }
 0x13f   :  { %1795 = vmatpush1.bf16.msra.mxu0 %v3729_v53 }
 0x142   :  { %1797 = vmatmul.mubr.bf16.vlgmr.msra.gmra.mrb[0].mxu0 %v626_v46 }
 0x166   :  { %v339_v59 = vpop.xlane.xlu0 %338 }
 0x16a   :  { %v361_v11 = vpop.xlane.xlu0 %360 }
 0x16b   :  { %v362_v29 = vsel %vm215_vm13, %v339_v59, %v361_v11  ;;  %v363_v62 = vsel %vm5996_vm10, %v339_v59, %v361_v11  ;;  %v364_v14 = vsel %vm5999_vm6, %v339_v59, %v361_v11  ;;  %v365_v36 = vsel %vm6000_vm12, %v339_v59, %v361_v11  ;;  %vm6002_vm6 = vmmov %vm5996_vm10 }
 0x16c   :  { %v317_v28 = vpop.xlane.xlu1 %316  ;;  %v367_v45 = vsel %vm220_vm8, %v339_v59, %v361_v11  ;;  %v368_v55 = vsel %vm221_vm14, %v339_v59, %v361_v11  ;;  %vm6003_vm12 = vcmp.eq.s32.totalorder %v4531_v50, 1  ;;  %vm6005_vm10 = vcmp.eq.s32.totalorder %v4538_v52, 1 }
 0x16d   :  { %v372_v20 = vsel %vm5997_vm7, %v317_v28, %v362_v29  ;;  %v373_v10 = vsel %vm5998_vm11, %v317_v28, %v363_v62  ;;  %v374_v34 = vsel %vm207_vm5, %v317_v28, %v364_v14  ;;  %v375_v40 = vsel %vm208_vm4, %v317_v28, %v365_v36 }
 0x16e   :  { %v382_v32 = vmul.f32 0.0025510204, %v372_v20  ;;  %v383_v33 = vmul.f32 0.0025510204, %v373_v10  ;;  %v384_v37 = vmul.f32 0.0025510204, %v374_v34  ;;  %v377_v51 = vsel %vm210_vm1, %v317_v28, %v367_v45 }
 0x16f   :  { %vm6001_vm11 = vcmp.eq.s32.totalorder %v4553_v56, 1  ;;  %v385_v21 = vmul.f32 0.0025510204, %v375_v40  ;;  %v387_v57 = vmul.f32 0.0025510204, %v377_v51  ;;  %v378_v31 = vsel %vm211_vm3, %v317_v28, %v368_v55 }
 0x170   :  { %v5187_v38 = vsub.f32 %v4559_v60, %v382_v32  ;;  %v5190_v39 = vsub.f32 %v4540_v35, %v383_v33  ;;  %v366_v41 = vsel %vm6001_vm11, %v339_v59, %v361_v11  ;;  %v5197_v42 = vsub.f32 %v4688_v44, %v384_v37 }
 0x171   :  { %v376_v60 = vsel %vm209_vm9, %v317_v28, %v366_v41  ;;  %v5208_v48 = vsub.f32 %v4712_v13, %v385_v21  ;;  %vm6004_vm7 = vcmp.eq.s32.totalorder %v4595_v7, 1  ;;  %v388_v6 = vmul.f32 0.0025510204, %v378_v31 }
 0x172   :  { %v402_v17 = vmul.f32 %v5187_v38, %v5187_v38  ;;  %v403_v35 = vmul.f32 %v5190_v39, %v5190_v39  ;;  %v386_v47 = vmul.f32 0.0025510204, %v376_v60  ;;  %v404_v44 = vmul.f32 %v5197_v42, %v5197_v42 }
 0x173   :  { %v405_v13 = vmul.f32 %v5208_v48, %v5208_v48  ;;  %v369_v5 = vsel %vm6004_vm7, %v339_v59, %v361_v11  ;;  %v5232_v16 = vsub.f32 %v4736_v23, %v387_v57  ;;  %vm6006_vm11 = vcmp.eq.s32.totalorder %v4452_v9, 2 }
 0x174   :  { %v434_v53 = vsel %vm215_vm13, %v402_v17, 0.0  ;;  %v435_v46 = vsel %vm6002_vm6, %v403_v35, 0.0  ;;  %v5221_v61 = vsub.f32 %v4714_v0, %v386_v47  ;;  %v436_v58 = vsel %vm6003_vm12, %v404_v44, 0.0 }
 0x175   :  { %v444_v4 = vadd.f32 %v435_v46, %v434_v53  ;;  %v379_v18 = vsel %vm212_vm2, %v317_v28, %v369_v5  ;;  %v437_v19 = vsel %vm6005_vm10, %v405_v13, 0.0  ;;  %v456_v22 = vsel %vm6006_vm11, %v402_v17, 0.0 }
 0x176   :  { %v406_v0 = vmul.f32 %v5221_v61, %v5221_v61  ;;  %v370_v25 = vsel %vm223_vm0, %v339_v59, %v361_v11  ;;  %v389_v54 = vmul.f32 0.0025510204, %v379_v18  ;;  %v5245_v23 = vsub.f32 %v4752_v27, %v388_v6 }
 0x177   :  { %v445_v2 = vadd.f32 %v444_v4, %v436_v58  ;;  %v407_v12 = vmul.f32 %v5232_v16, %v5232_v16  ;;  %v371_v26 = vsel %vm224_vm15, %v339_v59, %v361_v11  ;;  %vm6007_vm6 = vcmp.eq.s32.totalorder %v4859_v30, 0  ;;  %v788_v58 = vld [vmem:[%s5957_s2] sm:$0x3] }
 0x178   :  { %v380_v29 = vsel %vm6007_vm6, %v317_v28, %v370_v25  ;;  %vm6008_vm12 = vcmp.eq.s32.totalorder %v4553_v56, 1  ;;  %vm6009_vm7 = vcmp.eq.s32.totalorder %v4839_v24, 0  ;;  %v5258_v27 = vsub.f32 %v4750_v15, %v389_v54 }
 0x179   :  { %v438_v62 = vsel %vm6008_vm12, %v406_v0, 0.0  ;;  %v446_v20 = vadd.f32 %v445_v2, %v437_v19  ;;  %v381_v10 = vsel %vm6009_vm7, %v317_v28, %v371_v26  ;;  %v390_v14 = vmul.f32 0.0025510204, %v380_v29 }
 0x17a   :  { %v408_v32 = vmul.f32 %v5245_v23, %v5245_v23  ;;  %v391_v33 = vmul.f32 0.0025510204, %v381_v10  ;;  %v439_v59 = vsel %vm220_vm8, %v407_v12, 0.0  ;;  %vm6010_vm10 = vcmp.eq.s32.totalorder %v4434_v3, 2 }
 0x17b   :  { %v447_v11 = vadd.f32 %v446_v20, %v438_v62  ;;  %v457_v34 = vsel %vm6010_vm10, %v403_v35, 0.0  ;;  %v5267_v36 = vshrl.u32 %v34_v63, 7  ;;  %v5270_v28 = vsub.f32 %v4910_v49, %v390_v14 }
 0x17c   :  { %v409_v15 = vmul.f32 %v5258_v27, %v5258_v27  ;;  %v440_v37 = vsel %vm221_vm14, %v408_v32, 0.0  ;;  %v5277_v40 = vsub.f32 %v4903_v43, %v391_v33  ;;  %vm6011_vm11 = vcmp.eq.s32.totalorder %v4531_v50, 2 }
 0x17d   :  { %v448_v41 = vadd.f32 %v447_v11, %v439_v59  ;;  %v458_v21 = vsel %vm6011_vm11, %v404_v44, 0.0  ;;  %v410_v63 = vmul.f32 %v5270_v28, %v5270_v28  ;;  %vm6012_vm6 = vcmp.eq.s32.totalorder %v4595_v7, 1 }
 0x17e   :  { %v441_v49 = vsel %vm6012_vm6, %v409_v15, 0.0  ;;  %vm6013_vm12 = vcmp.eq.s32.totalorder %v4538_v52, 2  ;;  %v466_v45 = vadd.f32 %v457_v34, %v456_v22  ;;  %v411_v47 = vmul.f32 %v5277_v40, %v5277_v40 }
 0x17f   :  { %v459_v60 = vsel %vm6013_vm12, %v405_v13, 0.0  ;;  %v449_v51 = vadd.f32 %v448_v41, %v440_v37  ;;  %vm6014_vm7 = vcmp.eq.s32.totalorder %v4452_v9, 0  ;;  %vm6015_vm10 = vcmp.eq.s32.totalorder %v4434_v3, 0 }
 0x180   :  { %v412_v43 = vsel %vm6014_vm7, %v402_v17, 0.0  ;;  %v413_v53 = vsel %vm6015_vm10, %v403_v35, 0.0  ;;  %v5294_v46 = vsub.s32 0, %v5267_v36  ;;  %v5297_v55 = vsub.s32 1, %v5267_v36 }
 0x181   :  { %v442_v57 = vsel %vm223_vm0, %v410_v63, 0.0  ;;  %v467_v31 = vadd.f32 %v466_v45, %v458_v21  ;;  %v443_v17 = vsel %vm224_vm15, %v411_v47, 0.0  ;;  %v450_v4 = vadd.f32 %v449_v51, %v441_v49 }
 0x182   :  { %vm6016_vm11 = vcmp.eq.s32.totalorder %v4553_v56, 2  ;;  %v414_v5 = vsel %vm207_vm5, %v404_v44, 0.0  ;;  %vm6017_vm6 = vcmask 195584   ;;  %v422_v19 = vadd.f32 %v413_v53, %v412_v43 }
 0x183   :  { %v460_v35 = vsel %vm6016_vm11, %v406_v0, 0.0  ;;  %v452_v6 = vsel %vm6017_vm6, %v443_v17, 0.0  ;;  %v468_v18 = vadd.f32 %v467_v31, %v459_v60  ;;  %v451_v2 = vadd.f32 %v450_v4, %v442_v57 }
 0x184   :  { %vm6018_vm12 = vcmp.eq.s32.totalorder %v4581_v1, 2  ;;  %v415_v25 = vsel %vm208_vm4, %v405_v13, 0.0  ;;  %v793_v54 = vrot.slane %v788_v58, %v5294_v46  ;;  %v423_v29 = vadd.f32 %v422_v19, %v414_v5  ;;  %v3881_v1 = vld [vmem:[%s5958_s3 + $0x6c] ss:$40 sps:$4 sm:$0xff]  }
 0x185   :  { %v461_v22 = vsel %vm6018_vm12, %v407_v12, 0.0  ;;  %v469_v26 = vadd.f32 %v468_v18, %v460_v35  ;;  %v797_v62 = vrot.slane %v788_v58, %v5297_v55  ;;  %v453_v20 = vadd.f32 %v452_v6, %v451_v2 }
 0x186   :  { %vm6019_vm7 = vcmp.eq.s32.totalorder %v4597_v8, 2  ;;  %v416_v10 = vsel %vm209_vm9, %v406_v0, 0.0  ;;  %v424_v33 = vadd.f32 %v423_v29, %v415_v25  ;;  %vm6020_vm10 = vcmp.eq.s32.totalorder %v4595_v7, 2 }
 0x187   :  { %v462_v44 = vsel %vm6019_vm7, %v408_v32, 0.0  ;;  %v470_v14 = vadd.f32 %v469_v26, %v461_v22  ;;  %454 = vadd.xlane.f32.xlu1 %v453_v20  ;;  %v463_v13 = vsel %vm6020_vm10, %v409_v15, 0.0  ;;  %v417_v11 = vsel %vm210_vm1, %v407_v12, 0.0 }
 0x188   :  { %vm6021_vm11 = vcmp.eq.s32.totalorder %v4839_v24, 2  ;;  %v425_v49 = vadd.f32 %v424_v33, %v416_v10  ;;  %vm6022_vm6 = vcmp.eq.s32.totalorder %v4859_v30, 2  ;;  %v418_v51 = vsel %vm211_vm3, %v408_v32, 0.0 }
 0x189   :  { %v465_v41 = vsel %vm6021_vm11, %v411_v47, 0.0  ;;  %v471_v21 = vadd.f32 %v470_v14, %v462_v44  ;;  %v464_v0 = vsel %vm6022_vm6, %v410_v63, 0.0  ;;  %vm6023_vm12 = vcmask 195584  }
 0x18a   :  { %v426_v31 = vadd.f32 %v425_v49, %v417_v11  ;;  %v474_v58 = vsel %vm6023_vm12, %v465_v41, 0.0  ;;  %v419_v17 = vsel %vm212_vm2, %v409_v15, 0.0  ;;  %vm6024_vm7 = vcmp.eq.s32.totalorder %v4839_v24, 0  ;;  %vm6026_vm11 = vmmov %vm6023_vm12  ;;  %v3780_v41 = vld [vmem:[%s5958_s3 + $0x8] ss:$40 sps:$4 sm:$0xff]  }
 0x18b   :  { %v472_v57 = vadd.f32 %v471_v21, %v463_v13  ;;  %v421_v5 = vsel %vm6024_vm7, %v411_v47, 0.0  ;;  %vm6025_vm10 = vcmp.eq.s32.totalorder %v4859_v30, 0  ;;  %v3785_v49 = vld [vmem:[%s5958_s3 + $0x5c] ss:$40 sps:$4 sm:$0xff]   ;;  %vm6027_vm6 = vcmp.eq.s32.totalorder %v4434_v3, 1 }
 0x18c   :  { %v427_v6 = vadd.f32 %v426_v31, %v418_v51  ;;  %v420_v32 = vsel %vm6025_vm10, %v410_v63, 0.0  ;;  %v3789_v51 = vld [vmem:[%s5958_s3 + $0xf8] ss:$40 sps:$4 sm:$0xff]   ;;  %vm6028_vm12 = vcmp.eq.s32.totalorder %v4531_v50, 1  ;;  %vm6029_vm7 = vcmp.eq.s32.totalorder %v4538_v52, 1 }
 0x18d   :  { %v473_v35 = vadd.f32 %v472_v57, %v464_v0  ;;  %v3791_v0 = vld [vmem:[%s5958_s3 + $0xfc] ss:$40 sps:$4 sm:$0xff]   ;;  %v3795_v31 = vld [vmem:[%s5958_s3 + $0x198] ss:$40 sps:$4 sm:$0xff]   ;;  %vm6030_vm10 = vcmp.eq.s32.totalorder %v4553_v56, 1 }
 0x18e   :  { %v428_v22 = vadd.f32 %v427_v6, %v419_v17  ;;  %v3797_v57 = vld [vmem:[%s5958_s3 + $0x19c] ss:$40 sps:$4 sm:$0xff]   ;;  %v3876_v56 = vld [vmem:[%s5958_s3 + $0x18] ss:$40 sps:$4 sm:$0xff]  }
 0x18f   :  { %v475_v2 = vadd.f32 %v474_v58, %v473_v35  ;;  %v3798_v58 = vld [vmem:[%s5958_s3 + $0x1e8] ss:$40 sps:$4 sm:$0xff]   ;;  %v3803_v17 = vld [vmem:[%s5958_s3 + $0x23c] ss:$40 sps:$4 sm:$0xff]   ;;  %v3806_v35 = vld [vmem:[%s5958_s3 + $0x28c] ss:$40 sps:$4 sm:$0xff]  }
 0x190   :  { %v429_v29 = vadd.f32 %v428_v22, %v420_v32  ;;  %v3809_v6 = vld [vmem:[%s5958_s3 + $0x2dc] ss:$40 sps:$4 sm:$0xff]   ;;  %v3812_v32 = vld [vmem:[%s5958_s3 + $0x32c] ss:$40 sps:$4 sm:$0xff]   ;;  %v3813_v22 = vld [vmem:[%s5958_s3 + $0x378] ss:$40 sps:$4 sm:$0xff]  }
 0x191   :  { %476 = vadd.xlane.f32.xlu0 %v475_v2  ;;  %v3815_v2 = vld [vmem:[%s5958_s3 + $0x37c] ss:$40 sps:$4 sm:$0xff]  }
 0x215   :  { %v1798_v59 = vpop.f32.mrb[0].mxu0 }
 0x216   :  { %v3450_v34 = vadd.f32 %v1798_v59, %v793_v54  ;;  %v1800_v37 = vpop.f32.mrb[1].mxu0  ;;  %v430_v54 = vsel %vm6026_vm11, %v421_v5, 0.0  ;;  %v3804_v5 = vld [vmem:[%s5958_s3 + $0x288] ss:$40 sps:$4 sm:$0xff]   ;;  %vm6032_vm11 = vcmp.eq.s32.totalorder %v4434_v3, 0 }
 0x217   :  { %v3451_v60 = vadd.f32 %v1800_v37, %v797_v62  ;;  %v1802_v45 = vpop.f32.mrb[2].mxu0  ;;  %v431_v20 = vadd.f32 %v430_v54, %v429_v29  ;;  %v3816_v54 = vld [vmem:[%s5958_s3 + $0x3c8] ss:$40 sps:$4 sm:$0xff]   ;;  %v3819_v29 = vld [vmem:[%s5958_s3 + $0x418] ss:$40 sps:$4 sm:$0xff]  }
 0x218   :  { %v1805_v43 = vmul.f32 %v3450_v34, %v3450_v34  ;;  %v1803_v53 = vpop.f32.mrb[3].mxu0  ;;  %v3786_v45 = vld [vmem:[%s5958_s3 + $0xa8] ss:$40 sps:$4 sm:$0xff]  }
 0x219   :  { %v1806_v12 = vmul.f32 %v3451_v60, %v3451_v60  ;;  %432 = vadd.xlane.f32.xlu1 %v431_v20  ;;  %v3792_v53 = vld [vmem:[%s5958_s3 + $0x148] ss:$40 sps:$4 sm:$0xff]   ;;  %v3827_v20 = vld [vmem:[%s5958_s3 + $0x4bc] ss:$40 sps:$4 sm:$0xff]  }
 0x21a   :  { %v1807_v4 = vmul.f32 %v3450_v34, %v1805_v43  ;;  %v3794_v43 = vld [vmem:[%s5958_s3 + $0x14c] ss:$40 sps:$4 sm:$0xff]  }
 0x21b   :  { %v1808_v18 = vmul.f32 %v3451_v60, %v1806_v12  ;;  %v3800_v12 = vld [vmem:[%s5958_s3 + $0x1ec] ss:$40 sps:$4 sm:$0xff]  }
 0x21c   :  { %v1809_v19 = vmul.f32 0.044715, %v1807_v4  ;;  %v3801_v4 = vld [vmem:[%s5958_s3 + $0x238] ss:$40 sps:$4 sm:$0xff]  }
 0x21d   :  { %v1810_v25 = vmul.f32 0.044715, %v1808_v18  ;;  %v3807_v18 = vld [vmem:[%s5958_s3 + $0x2d8] ss:$40 sps:$4 sm:$0xff]  }
 0x21e   :  { %v1811_v26 = vadd.f32 %v3450_v34, %v1809_v19  ;;  %v3810_v19 = vld [vmem:[%s5958_s3 + $0x328] ss:$40 sps:$4 sm:$0xff]  }
 0x21f   :  { %v1812_v15 = vadd.f32 %v3451_v60, %v1810_v25  ;;  %v3818_v25 = vld [vmem:[%s5958_s3 + $0x3cc] ss:$40 sps:$4 sm:$0xff]  }
 0x220   :  { %v1813_v62 = vmul.f32 0.7978846, %v1811_v26  ;;  %v3821_v26 = vld [vmem:[%s5958_s3 + $0x41c] ss:$40 sps:$4 sm:$0xff]  }
 0x221   :  { %v1814_v44 = vmul.f32 0.7978846, %v1812_v15  ;;  %v3824_v15 = vld [vmem:[%s5958_s3 + $0x46c] ss:$40 sps:$4 sm:$0xff]  }
 0x222   :  { %3972 = vtanh.f32 %v1813_v62  ;;  %v3822_v62 = vld [vmem:[%s5958_s3 + $0x468] ss:$40 sps:$4 sm:$0xff]  }
 0x223   :  { %3974 = vtanh.f32 %v1814_v44  ;;  %v3825_v44 = vld [vmem:[%s5958_s3 + $0x4b8] ss:$40 sps:$4 sm:$0xff]  }
 0x22c   :  { %v3973_v47 = vpop.eup %3972 }
 0x22d   :  { %v3975_v10 = vpop.eup %3974  ;;  %v1817_v14 = vadd.f32 1.0, %v3973_v47  ;;  %v3830_v47 = vld [vmem:[%s5958_s3 + $0x14] ss:$40 sps:$4 sm:$0xff]  }
 0x22e   :  { %v1818_v63 = vadd.f32 1.0, %v3975_v10  ;;  %v3828_v10 = vld [vmem:[%s5958_s3 + $0x10] ss:$40 sps:$4 sm:$0xff]  }
 0x22f   :  { %v1819_v33 = vmul.f32 0.5, %v1817_v14  ;;  %v3833_v14 = vld [vmem:[%s5958_s3 + $0x64] ss:$40 sps:$4 sm:$0xff]  }
 0x230   :  { %v1820_v59 = vmul.f32 0.5, %v1818_v63  ;;  %v3831_v63 = vld [vmem:[%s5958_s3 + $0x60] ss:$40 sps:$4 sm:$0xff]  }
 0x231   :  { %v1821_v13 = vmul.f32 %v3450_v34, %v1819_v33  ;;  %v3783_v34 = vld [vmem:[%s5958_s3 + $0x58] ss:$40 sps:$4 sm:$0xff]   ;;  %v3836_v33 = vld [vmem:[%s5958_s3 + $0xb4] ss:$40 sps:$4 sm:$0xff]  }
 0x232   :  { %v1822_v11 = vmul.f32 %v3451_v60, %v1820_v59  ;;  %v3788_v60 = vld [vmem:[%s5958_s3 + $0xac] ss:$40 sps:$4 sm:$0xff]   ;;  %v3834_v59 = vld [vmem:[%s5958_s3 + $0xb0] ss:$40 sps:$4 sm:$0xff]  }
 0x233   :  { %v5344_v21 = vpack.c.bf16 %v1821_v13, %v1821_v13  ;;  %v3839_v13 = vld [vmem:[%s5958_s3 + $0x104] ss:$40 sps:$4 sm:$0xff]  }
 0x234   :  { %v5339_v37 = vpack.c.bf16 %v1822_v11, %v1822_v11  ;;  %v3837_v11 = vld [vmem:[%s5958_s3 + $0x100] ss:$40 sps:$4 sm:$0xff]  }
 0x236   :  { %2871 = vmatprep.mubr.bf16.mxu1 %v5339_v37 }
 0x237   :  { %2872 = vmatmul.mubr.bf16.vlgmr.msra.gmra.mrb[0].mxu1 %v5344_v21 }
 0x238   :  { %2881 = vmatpush1.bf16.msra.mxu1 %v3780_v41  ;;  %2912 = vmatprep.mubr.bf16.mxu1 %v5339_v37  ;;  %v3842_v41 = vld [vmem:[%s5958_s3 + $0x154] ss:$40 sps:$4 sm:$0xff]  }
 0x239   :  { %2882 = vmatprep.subr.bf16.mxu1 %v3785_v49  ;;  %v3840_v49 = vld [vmem:[%s5958_s3 + $0x150] ss:$40 sps:$4 sm:$0xff]  }
 0x23c   :  { %2883 = vmatpush1.bf16.msra.mxu1 %v3783_v34  ;;  %v3845_v34 = vld [vmem:[%s5958_s3 + $0x1a4] ss:$40 sps:$4 sm:$0xff]  }
 0x23d   :  { %2884 = vmatprep.subr.bf16.mxu1 %v3788_v60  ;;  %v3843_v60 = vld [vmem:[%s5958_s3 + $0x1a0] ss:$40 sps:$4 sm:$0xff]  }
 0x240   :  { %2885 = vmatpush1.bf16.msra.mxu1 %v3786_v45  ;;  %v3848_v45 = vld [vmem:[%s5958_s3 + $0x1f4] ss:$40 sps:$4 sm:$0xff]  }
 0x241   :  { %2886 = vmatprep.subr.bf16.mxu1 %v3791_v0  ;;  %v3846_v0 = vld [vmem:[%s5958_s3 + $0x1f0] ss:$40 sps:$4 sm:$0xff]  }
 0x244   :  { %2887 = vmatpush1.bf16.msra.mxu1 %v3789_v51  ;;  %v3851_v51 = vld [vmem:[%s5958_s3 + $0x244] ss:$40 sps:$4 sm:$0xff]  }
 0x245   :  { %2888 = vmatprep.subr.bf16.mxu1 %v3794_v43  ;;  %v3849_v43 = vld [vmem:[%s5958_s3 + $0x240] ss:$40 sps:$4 sm:$0xff]  }
 0x248   :  { %2889 = vmatpush1.bf16.msra.mxu1 %v3792_v53  ;;  %v3854_v53 = vld [vmem:[%s5958_s3 + $0x294] ss:$40 sps:$4 sm:$0xff]  }
 0x249   :  { %2890 = vmatprep.subr.bf16.mxu1 %v3797_v57  ;;  %v3852_v57 = vld [vmem:[%s5958_s3 + $0x290] ss:$40 sps:$4 sm:$0xff]  }
 0x24c   :  { %2891 = vmatpush1.bf16.msra.mxu1 %v3795_v31  ;;  %v3857_v31 = vld [vmem:[%s5958_s3 + $0x2e4] ss:$40 sps:$4 sm:$0xff]  }
 0x24d   :  { %2892 = vmatprep.subr.bf16.mxu1 %v3800_v12  ;;  %v3855_v12 = vld [vmem:[%s5958_s3 + $0x2e0] ss:$40 sps:$4 sm:$0xff]  }
 0x250   :  { %2893 = vmatpush1.bf16.msra.mxu1 %v3798_v58  ;;  %v3860_v58 = vld [vmem:[%s5958_s3 + $0x334] ss:$40 sps:$4 sm:$0xff]  }
 0x251   :  { %2894 = vmatprep.subr.bf16.mxu1 %v3803_v17  ;;  %v3858_v17 = vld [vmem:[%s5958_s3 + $0x330] ss:$40 sps:$4 sm:$0xff]  }
 0x254   :  { %2895 = vmatpush1.bf16.msra.mxu1 %v3801_v4  ;;  %v3863_v4 = vld [vmem:[%s5958_s3 + $0x384] ss:$40 sps:$4 sm:$0xff]  }
 0x255   :  { %2896 = vmatprep.subr.bf16.mxu1 %v3806_v35  ;;  %v3861_v35 = vld [vmem:[%s5958_s3 + $0x380] ss:$40 sps:$4 sm:$0xff]  }
 0x258   :  { %2897 = vmatpush1.bf16.msra.mxu1 %v3804_v5  ;;  %v3866_v5 = vld [vmem:[%s5958_s3 + $0x3d4] ss:$40 sps:$4 sm:$0xff]  }
 0x259   :  { %2898 = vmatprep.subr.bf16.mxu1 %v3809_v6  ;;  %v3864_v6 = vld [vmem:[%s5958_s3 + $0x3d0] ss:$40 sps:$4 sm:$0xff]  }
 0x25c   :  { %2899 = vmatpush1.bf16.msra.mxu1 %v3807_v18  ;;  %v3869_v18 = vld [vmem:[%s5958_s3 + $0x424] ss:$40 sps:$4 sm:$0xff]  }
 0x25d   :  { %2900 = vmatprep.subr.bf16.mxu1 %v3812_v32  ;;  %v3867_v32 = vld [vmem:[%s5958_s3 + $0x420] ss:$40 sps:$4 sm:$0xff]  }
 0x260   :  { %2901 = vmatpush1.bf16.msra.mxu1 %v3810_v19  ;;  %v3872_v19 = vld [vmem:[%s5958_s3 + $0x474] ss:$40 sps:$4 sm:$0xff]  }
 0x261   :  { %2902 = vmatprep.subr.bf16.mxu1 %v3815_v2  ;;  %v455_v2 = vpop.xlane.xlu1 %454 }
 0x264   :  { %2903 = vmatpush1.bf16.msra.mxu1 %v3813_v22  ;;  %v477_v22 = vpop.xlane.xlu0 %476 }
 0x265   :  { %2904 = vmatprep.subr.bf16.mxu1 %v3818_v25  ;;  %v3870_v25 = vld [vmem:[%s5958_s3 + $0x470] ss:$40 sps:$4 sm:$0xff]  }
 0x268   :  { %2905 = vmatpush1.bf16.msra.mxu1 %v3816_v54  ;;  %v3875_v54 = vld [vmem:[%s5958_s3 + $0x4c4] ss:$40 sps:$4 sm:$0xff]  }
 0x269   :  { %2906 = vmatprep.subr.bf16.mxu1 %v3821_v26  ;;  %v478_v26 = vsel %vm215_vm13, %v455_v2, %v477_v22  ;;  %vm6031_vm13 = vcmp.eq.s32.totalorder %v4452_v9, 0 }
 0x26c   :  { %2907 = vmatpush1.bf16.msra.mxu1 %v3819_v29  ;;  %v479_v29 = vsel %vm6027_vm6, %v455_v2, %v477_v22 }
 0x26d   :  { %2908 = vmatprep.subr.bf16.mxu1 %v3824_v15  ;;  %v480_v15 = vsel %vm6028_vm12, %v455_v2, %v477_v22 }
 0x270   :  { %2909 = vmatpush1.bf16.msra.mxu1 %v3822_v62  ;;  %v481_v62 = vsel %vm6029_vm7, %v455_v2, %v477_v22 }
 0x271   :  { %2910 = vmatprep.subr.bf16.mxu1 %v3827_v20  ;;  %v482_v20 = vsel %vm6030_vm10, %v455_v2, %v477_v22 }
 0x274   :  { %2911 = vmatpush1.bf16.msra.mxu1 %v3825_v44 }
 0x275   :  { %2921 = vmatprep.subr.bf16.mxu1 %v3830_v47  ;;  %v3873_v47 = vld [vmem:[%s5958_s3 + $0x4c0] ss:$40 sps:$4 sm:$0xff]  }
 0x277   :  { %2913 = vmatmul.mubr.bf16.vlgmr.msra.gmra.mrb[4].mxu1 %v5344_v21 }
 0x278   :  { %2922 = vmatpush1.bf16.msra.mxu1 %v3828_v10  ;;  %2953 = vmatprep.mubr.bf16.mxu1 %v5339_v37  ;;  %v483_v10 = vsel %vm220_vm8, %v455_v2, %v477_v22  ;;  %vm6033_vm8 = vcmp.eq.s32.totalorder %v4595_v7, 1  ;;  %v3879_v7 = vld [vmem:[%s5958_s3 + $0x68] ss:$40 sps:$4 sm:$0xff]  }
 0x279   :  { %2923 = vmatprep.subr.bf16.mxu1 %v3833_v14  ;;  %v485_v9 = vsel %vm6033_vm8, %v455_v2, %v477_v22 }
 0x27c   :  { %2924 = vmatpush1.bf16.msra.mxu1 %v3831_v63 }
 0x27d   :  { %2925 = vmatprep.subr.bf16.mxu1 %v3836_v33 }
 0x280   :  { %2926 = vmatpush1.bf16.msra.mxu1 %v3834_v59  ;;  %v3878_v59 = vld [vmem:[%s5958_s3 + $0x1c] ss:$40 sps:$4 sm:$0xff]  }
 0x281   :  { %2927 = vmatprep.subr.bf16.mxu1 %v3839_v13  ;;  %v484_v13 = vsel %vm221_vm14, %v455_v2, %v477_v22 }
 0x284   :  { %2928 = vmatpush1.bf16.msra.mxu1 %v3837_v11 }
 0x285   :  { %2929 = vmatprep.subr.bf16.mxu1 %v3842_v41 }
 0x288   :  { %2930 = vmatpush1.bf16.msra.mxu1 %v3840_v49  ;;  %v486_v49 = vsel %vm223_vm0, %v455_v2, %v477_v22 }
 0x289   :  { %2931 = vmatprep.subr.bf16.mxu1 %v3845_v34  ;;  %v487_v34 = vsel %vm224_vm15, %v455_v2, %v477_v22 }
 0x28c   :  { %2932 = vmatpush1.bf16.msra.mxu1 %v3843_v60 }
 0x28d   :  { %2933 = vmatprep.subr.bf16.mxu1 %v3848_v45 }
 0x290   :  { %2934 = vmatpush1.bf16.msra.mxu1 %v3846_v0 }
 0x291   :  { %2935 = vmatprep.subr.bf16.mxu1 %v3851_v51 }
 0x294   :  { %2936 = vmatpush1.bf16.msra.mxu1 %v3849_v43 }
 0x295   :  { %2937 = vmatprep.subr.bf16.mxu1 %v3854_v53 }
 0x298   :  { %2938 = vmatpush1.bf16.msra.mxu1 %v3852_v57 }
 0x299   :  { %2939 = vmatprep.subr.bf16.mxu1 %v3857_v31 }
 0x29c   :  { %2940 = vmatpush1.bf16.msra.mxu1 %v3855_v12 }
 0x29d   :  { %2941 = vmatprep.subr.bf16.mxu1 %v3860_v58 }
 0x2a0   :  { %2942 = vmatpush1.bf16.msra.mxu1 %v3858_v17 }
 0x2a1   :  { %2943 = vmatprep.subr.bf16.mxu1 %v3863_v4 }
 0x2a4   :  { %2944 = vmatpush1.bf16.msra.mxu1 %v3861_v35  ;;  %v3882_v35 = vld [vmem:[%s5958_s3 + $0xb8] ss:$40 sps:$4 sm:$0xff]  }
 0x2a5   :  { %2945 = vmatprep.subr.bf16.mxu1 %v3866_v5 }
 0x2a6   :  { %v433_v44 = vpop.xlane.xlu1 %432 }
 0x2a7   :  { %v488_v14 = vsel %vm6031_vm13, %v433_v44, %v478_v26  ;;  %v489_v63 = vsel %vm6032_vm11, %v433_v44, %v479_v29  ;;  %v490_v33 = vsel %vm207_vm5, %v433_v44, %v480_v15  ;;  %v491_v11 = vsel %vm208_vm4, %v433_v44, %v481_v62  ;;  %v3890_v15 = vld [vmem:[%s5958_s3 + $0x15c] ss:$40 sps:$4 sm:$0xff]  }
 0x2a8   :  { %2946 = vmatpush1.bf16.msra.mxu1 %v3864_v6  ;;  %v492_v3 = vsel %vm209_vm9, %v433_v44, %v482_v20  ;;  %v5566_v41 = vmul.f32 0.0025575447, %v488_v14  ;;  %v5568_v50 = vmul.f32 0.0025575447, %v489_v63  ;;  %v493_v52 = vsel %vm210_vm1, %v433_v44, %v483_v10  ;;  %v3887_v6 = vld [vmem:[%s5958_s3 + $0x10c] ss:$40 sps:$4 sm:$0xff]  }
 0x2a9   :  { %2947 = vmatprep.subr.bf16.mxu1 %v3869_v18  ;;  %v5576_v60 = vmul.f32 0.0025575447, %v490_v33  ;;  %v494_v45 = vsel %vm211_vm3, %v433_v44, %v484_v13  ;;  %v5583_v0 = vmul.f32 0.0025575447, %v491_v11  ;;  %v495_v51 = vsel %vm212_vm2, %v433_v44, %v485_v9  ;;  %v3888_v9 = vld [vmem:[%s5958_s3 + $0x158] ss:$40 sps:$4 sm:$0xff]  }
 0x2aa   :  { %3976 = vrsqrt.f32 %v5566_v41  ;;  %v5591_v43 = vmul.f32 0.0025575447, %v492_v3  ;;  %vm6034_vm4 = vcmp.eq.s32.totalorder %v4859_v30, 0  ;;  %vm6035_vm5 = vcmp.eq.s32.totalorder %v4839_v24, 0  ;;  %v3884_v24 = vld [vmem:[%s5958_s3 + $0xbc] ss:$40 sps:$4 sm:$0xff]  }
 0x2ab   :  { %v496_v53 = vsel %vm6034_vm4, %v433_v44, %v486_v49  ;;  %v497_v8 = vsel %vm6035_vm5, %v433_v44, %v487_v34  ;;  %v5597_v57 = vmul.f32 0.0025575447, %v493_v52  ;;  %3978 = vrsqrt.f32 %v5568_v50  ;;  %v3893_v52 = vld [vmem:[%s5958_s3 + $0x1ac] ss:$40 sps:$4 sm:$0xff]  }
 0x2ac   :  { %2948 = vmatpush1.bf16.msra.mxu1 %v3867_v32  ;;  %v5601_v31 = vmul.f32 0.0025575447, %v494_v45  ;;  %3980 = vrsqrt.f32 %v5576_v60  ;;  %v5608_v30 = vmul.f32 0.0025575447, %v495_v51  ;;  %v5614_v12 = vmul.f32 0.0025575447, %v496_v53 }
 0x2ad   :  { %2949 = vmatprep.subr.bf16.mxu1 %v3872_v19  ;;  %3982 = vrsqrt.f32 %v5583_v0  ;;  %v5616_v58 = vmul.f32 0.0025575447, %v497_v8  ;;  %vm510_vm2 = vcmp.eq.f32.partialorder %v5566_v41, inf  ;;  %vm512_vm3 = vcmp.eq.f32.partialorder %v5566_v41, 0.0 }
 0x2ae   :  { %3984 = vrsqrt.f32 %v5591_v43  ;;  %v513_v17 = vand.u32 2147483648, %v5566_v41  ;;  %vm517_vm9 = vcmp.eq.f32.partialorder %v5568_v50, inf  ;;  %vm519_vm14 = vcmp.eq.f32.partialorder %v5568_v50, 0.0 }
 0x2af   :  { %3986 = vrsqrt.f32 %v5597_v57  ;;  %v520_v4 = vand.u32 2147483648, %v5568_v50  ;;  %vm524_vm1 = vcmp.eq.f32.partialorder %v5576_v60, inf  ;;  %vm526_vm15 = vcmp.eq.f32.partialorder %v5576_v60, 0.0 }
 0x2b0   :  { %2950 = vmatpush1.bf16.msra.mxu1 %v3870_v25  ;;  %3988 = vrsqrt.f32 %v5601_v31  ;;  %v527_v5 = vand.u32 2147483648, %v5576_v60  ;;  %vm531_vm0 = vcmp.eq.f32.partialorder %v5583_v0, inf  ;;  %vm533_vm6 = vcmp.eq.f32.partialorder %v5583_v0, 0.0 }
 0x2b1   :  { %2951 = vmatprep.subr.bf16.mxu1 %v3875_v54  ;;  %3990 = vrsqrt.f32 %v5608_v30  ;;  %v534_v18 = vand.u32 2147483648, %v5583_v0  ;;  %vm538_vm12 = vcmp.eq.f32.partialorder %v5591_v43, inf  ;;  %vm540_vm7 = vcmp.eq.f32.partialorder %v5591_v43, 0.0  ;;  %v3885_v54 = vld [vmem:[%s5958_s3 + $0x108] ss:$40 sps:$4 sm:$0xff]  }
 0x2b2   :  { %3992 = vrsqrt.f32 %v5614_v12  ;;  %v541_v19 = vand.u32 2147483648, %v5591_v43  ;;  %vm545_vm10 = vcmp.eq.f32.partialorder %v5597_v57, inf  ;;  %vm547_vm13 = vcmp.eq.f32.partialorder %v5597_v57, 0.0 }
 0x2b3   :  { %3994 = vrsqrt.f32 %v5616_v58  ;;  %v548_v22 = vand.u32 2147483648, %v5597_v57  ;;  %vm552_vm11 = vcmp.eq.f32.partialorder %v5601_v31, inf  ;;  %v555_v26 = vand.u32 2147483648, %v5601_v31 }
 0x2b4   :  { %2952 = vmatpush1.bf16.msra.mxu1 %v3873_v47  ;;  %v3977_v32 = vpop.eup %3976  ;;  %vm561_vm5 = vcmp.eq.f32.partialorder %v5608_v30, 0.0  ;;  %v562_v44 = vand.u32 2147483648, %v5608_v30  ;;  %vm566_vm4 = vcmp.eq.f32.partialorder %v5614_v12, inf  ;;  %vm568_vm8 = vcmp.eq.f32.partialorder %v5614_v12, 0.0 }
 0x2b5   :  { %2962 = vmatprep.subr.bf16.mxu1 %v3878_v59  ;;  %v509_v2 = vmul.f32 %v3977_v32, %v5566_v41  ;;  %v3979_v25 = vpop.eup %3978  ;;  %v569_v14 = vand.u32 2147483648, %v5614_v12 }
 0x2b6   :  { %v3981_v29 = vpop.eup %3980  ;;  %v516_v20 = vmul.f32 %v3979_v25, %v5568_v50 }
 0x2b7   :  { %2954 = vmatmul.mubr.bf16.vlgmr.msra.gmra.mrb[8].mxu1 %v5344_v21  ;;  %v511_v62 = vsel %vm510_vm2, %v5566_v41, %v509_v2  ;;  %v3983_v47 = vpop.eup %3982  ;;  %v523_v10 = vmul.f32 %v3981_v29, %v5576_v60  ;;  %vm573_vm2 = vcmp.eq.f32.partialorder %v5616_v58, inf  ;;  %v3896_v2 = vld [vmem:[%s5958_s3 + $0x1fc] ss:$40 sps:$4 sm:$0xff]  }
 0x2b8   :  { %2963 = vmatpush1.bf16.msra.mxu1 %v3876_v56  ;;  %2994 = vmatprep.mubr.bf16.mxu1 %v5339_v37  ;;  %v3985_v63 = vpop.eup %3984  ;;  %v514_v33 = vsel %vm512_vm3, %v513_v17, %v511_v62  ;;  %v518_v59 = vsel %vm517_vm9, %v5568_v50, %v516_v20  ;;  %v530_v13 = vmul.f32 %v3983_v47, %v5583_v0  ;;  %vm575_vm3 = vcmp.eq.f32.partialorder %v5616_v58, 0.0 }
 0x2b9   :  { %2964 = vmatprep.subr.bf16.mxu1 %v3881_v1  ;;  %v3987_v11 = vpop.eup %3986  ;;  %v521_v3 = vsel %vm519_vm14, %v520_v4, %v518_v59  ;;  %v525_v41 = vsel %vm524_vm1, %v5576_v60, %v523_v10  ;;  %v537_v49 = vmul.f32 %v3985_v63, %v5591_v43  ;;  %v576_v1 = vand.u32 2147483648, %v5616_v58 }
 0x2ba   :  { %v3989_v34 = vpop.eup %3988  ;;  %v528_v56 = vsel %vm526_vm15, %v527_v5, %v525_v41  ;;  %v532_v50 = vsel %vm531_vm0, %v5583_v0, %v530_v13  ;;  %v544_v45 = vmul.f32 %v3987_v11, %v5597_v57  ;;  %v578_v60 = vadd.f32 1e-06, %v514_v33  ;;  %v3897_v33 = vld [vmem:[%s5958_s3 + $0x248] ss:$40 sps:$4 sm:$0xff]   ;;  %v3900_v13 = vld [vmem:[%s5958_s3 + $0x298] ss:$40 sps:$4 sm:$0xff]  }
 0x2bb   :  { %v3991_v51 = vpop.eup %3990  ;;  %v535_v53 = vsel %vm533_vm6, %v534_v18, %v532_v50  ;;  %v539_v8 = vsel %vm538_vm12, %v5591_v43, %v537_v49  ;;  %v579_v5 = vadd.f32 1e-06, %v521_v3  ;;  %vm6036_vm9 = vcmp.eq.f32.partialorder %v5601_v31, 0.0  ;;  %v3903_v50 = vld [vmem:[%s5958_s3 + $0x2e8] ss:$40 sps:$4 sm:$0xff]  }
 0x2bc   :  { %2965 = vmatpush1.bf16.msra.mxu1 %v3879_v7  ;;  %v551_v7 = vmul.f32 %v3989_v34, %v5601_v31  ;;  %v542_v17 = vsel %vm540_vm7, %v541_v19, %v539_v8  ;;  %v546_v4 = vsel %vm545_vm10, %v5597_v57, %v544_v45  ;;  %v580_v19 = vadd.f32 1e-06, %v528_v56 }
 0x2bd   :  { %2966 = vmatprep.subr.bf16.mxu1 %v3884_v24  ;;  %v3993_v24 = vpop.eup %3992  ;;  %v549_v18 = vsel %vm547_vm13, %v548_v22, %v546_v4  ;;  %vm6037_vm14 = vcmp.eq.f32.partialorder %v5608_v30, inf  ;;  %v582_v62 = vadd.f32 1e-06, %v542_v17  ;;  %3996 = vrcp.f32 %v578_v60  ;;  %v3909_v17 = vld [vmem:[%s5958_s3 + $0x388] ss:$40 sps:$4 sm:$0xff]  }
 0x2be   :  { %v3995_v0 = vpop.eup %3994  ;;  %v553_v43 = vsel %vm552_vm11, %v5601_v31, %v551_v7  ;;  %v565_v32 = vmul.f32 %v3993_v24, %v5614_v12  ;;  %v583_v20 = vadd.f32 1e-06, %v549_v18  ;;  %3998 = vrcp.f32 %v579_v5  ;;  %v3915_v4 = vld [vmem:[%s5958_s3 + $0x428] ss:$40 sps:$4 sm:$0xff]   ;;  %v3918_v5 = vld [vmem:[%s5958_s3 + $0x478] ss:$40 sps:$4 sm:$0xff]  }
 0x2bf   :  { %v556_v25 = vsel %vm6036_vm9, %v555_v26, %v553_v43  ;;  %v572_v22 = vmul.f32 %v3995_v0, %v5616_v58  ;;  %4000 = vrcp.f32 %v580_v19  ;;  %vm6038_vm1 = vcmask 195584   ;;  %v3923_v0 = vld [vmem:[%s5958_s3 + $0x4cc] ss:$40 sps:$4 sm:$0xff]   ;;  %v3924_v43 = vld [vmem:[%s5958_s3 + $0x20] ss:$40 sps:$4 sm:$0xff]  }
 0x2c0   :  { %2967 = vmatpush1.bf16.msra.mxu1 %v3882_v35  ;;  %v558_v35 = vmul.f32 %v3991_v51, %v5608_v30  ;;  %v584_v47 = vadd.f32 1e-06, %v556_v25  ;;  %v3926_v18 = vld [vmem:[%s5958_s3 + $0x24] ss:$40 sps:$4 sm:$0xff]   ;;  %v3927_v19 = vld [vmem:[%s5958_s3 + $0x70] ss:$40 sps:$4 sm:$0xff]  }
 0x2c1   :  { %2968 = vmatprep.subr.bf16.mxu1 %v3887_v6  ;;  %v3891_v6 = vld [vmem:[%s5958_s3 + $0x1a8] ss:$40 sps:$4 sm:$0xff]   ;;  %v574_v26 = vsel %vm573_vm2, %v5616_v58, %v572_v22  ;;  %v3902_v58 = vld [vmem:[%s5958_s3 + $0x29c] ss:$40 sps:$4 sm:$0xff]  }
 0x2c2   :  { %v560_v57 = vsel %vm6037_vm14, %v5608_v30, %v558_v35  ;;  %v3894_v30 = vld [vmem:[%s5958_s3 + $0x1f8] ss:$40 sps:$4 sm:$0xff]   ;;  %v3920_v35 = vld [vmem:[%s5958_s3 + $0x47c] ss:$40 sps:$4 sm:$0xff]  }
 0x2c3   :  { %v563_v29 = vsel %vm561_vm5, %v562_v44, %v560_v57  ;;  %v577_v44 = vsel %vm575_vm3, %v576_v1, %v574_v26  ;;  %v3930_v25 = vld [vmem:[%s5958_s3 + $0xc0] ss:$40 sps:$4 sm:$0xff]   ;;  %v3935_v57 = vld [vmem:[%s5958_s3 + $0x114] ss:$40 sps:$4 sm:$0xff]   ;;  %v3938_v22 = vld [vmem:[%s5958_s3 + $0x164] ss:$40 sps:$4 sm:$0xff]  }
 0x2c4   :  { %2969 = vmatpush1.bf16.msra.mxu1 %v3885_v54  ;;  %v581_v54 = vadd.f32 1e-06, %v535_v53  ;;  %v585_v10 = vadd.f32 1e-06, %v563_v29  ;;  %v587_v63 = vadd.f32 1e-06, %v577_v44 }
 0x2c5   :  { %2970 = vmatprep.subr.bf16.mxu1 %v3890_v15  ;;  %v567_v15 = vsel %vm566_vm4, %v5614_v12, %v565_v32  ;;  %v3899_v12 = vld [vmem:[%s5958_s3 + $0x24c] ss:$40 sps:$4 sm:$0xff]   ;;  %v5841_v29 = vld [vmem:[%s5959_s4] sm:$0xff] }
 0x2c6   :  { %v570_v31 = vsel %vm568_vm8, %v569_v14, %v567_v15  ;;  %4002 = vrcp.f32 %v581_v54  ;;  %v3929_v32 = vld [vmem:[%s5958_s3 + $0x74] ss:$40 sps:$4 sm:$0xff]   ;;  %v3936_v54 = vld [vmem:[%s5958_s3 + $0x160] ss:$40 sps:$4 sm:$0xff]   ;;  %v1996_v26 = vrot.slane %v5841_v29, %v5297_v55 }
 0x2c7   :  { %v586_v14 = vadd.f32 1e-06, %v570_v31  ;;  %4004 = vrcp.f32 %v582_v62  ;;  %v3997_v59 = vpop.eup %3996  ;;  %v3941_v15 = vld [vmem:[%s5958_s3 + $0x1b4] ss:$40 sps:$4 sm:$0xff]   ;;  %v1992_v62 = vrot.slane %v5841_v29, %v5294_v46  ;;  %v3939_v31 = vld [vmem:[%s5958_s3 + $0x1b0] ss:$40 sps:$4 sm:$0xff]  }
 0x2c8   :  { %2971 = vmatpush1.bf16.msra.mxu1 %v3888_v9  ;;  %4006 = vrcp.f32 %v583_v20  ;;  %v3999_v11 = vpop.eup %3998  ;;  %v3905_v9 = vld [vmem:[%s5958_s3 + $0x2ec] ss:$40 sps:$4 sm:$0xff]   ;;  %v589_v3 = vmul.f32 %v3997_v59, %v5187_v38  ;;  %v3908_v38 = vld [vmem:[%s5958_s3 + $0x33c] ss:$40 sps:$4 sm:$0xff]   ;;  %v3945_v59 = vld [vmem:[%s5958_s3 + $0x250] ss:$40 sps:$4 sm:$0xff]  }
 0x2c9   :  { %2972 = vmatprep.subr.bf16.mxu1 %v3893_v52  ;;  %4008 = vrcp.f32 %v584_v47  ;;  %v4001_v41 = vpop.eup %4000  ;;  %v591_v49 = vmul.f32 %v3999_v11, %v5190_v39  ;;  %v3944_v20 = vld [vmem:[%s5958_s3 + $0x204] ss:$40 sps:$4 sm:$0xff]   ;;  %v3948_v11 = vld [vmem:[%s5958_s3 + $0x2a0] ss:$40 sps:$4 sm:$0xff]  }
 0x2ca   :  { %4010 = vrcp.f32 %v585_v10  ;;  %v593_v52 = vmul.f32 %v4001_v41, %v5197_v42  ;;  %608 = vst [vmem:[#allocation4] sm:$0xff] %v589_v3  ;;  %v3951_v3 = vld [vmem:[%s5958_s3 + $0x2f0] ss:$40 sps:$4 sm:$0xff]   ;;  %v3956_v41 = vld [vmem:[%s5958_s3 + $0x344] ss:$40 sps:$4 sm:$0xff]  }
 0x2cb   :  { %4012 = vrcp.f32 %v586_v14  ;;  %609 = vst [vmem:[#allocation4 + $0x8] sm:$0xff] %v591_v49  ;;  %v3942_v14 = vld [vmem:[%s5958_s3 + $0x200] ss:$40 sps:$4 sm:$0xff]  }
 0x2cc   :  { %2973 = vmatpush1.bf16.msra.mxu1 %v3891_v6  ;;  %4014 = vrcp.f32 %v587_v63  ;;  %610 = vst [vmem:[#allocation4 + $0x10] sm:$0xff] %v593_v52  ;;  %v3921_v6 = vld [vmem:[%s5958_s3 + $0x4c8] ss:$40 sps:$4 sm:$0xff]  }
 0x2cd   :  { %2974 = vmatprep.subr.bf16.mxu1 %v3896_v2  ;;  %v3932_v2 = vld [vmem:[%s5958_s3 + $0xc4] ss:$40 sps:$4 sm:$0xff]   ;;  %v3954_v49 = vld [vmem:[%s5958_s3 + $0x340] ss:$40 sps:$4 sm:$0xff]   ;;  %v3957_v52 = vld [vmem:[%s5958_s3 + $0x390] ss:$40 sps:$4 sm:$0xff]  }
 0x2d0   :  { %2975 = vmatpush1.bf16.msra.mxu1 %v3894_v30  ;;  %v4003_v34 = vpop.eup %4002 }
 0x2d1   :  { %2976 = vmatprep.subr.bf16.mxu1 %v3899_v12  ;;  %v4005_v56 = vpop.eup %4004  ;;  %v595_v45 = vmul.f32 %v4003_v34, %v5208_v48  ;;  %v3906_v48 = vld [vmem:[%s5958_s3 + $0x338] ss:$40 sps:$4 sm:$0xff]   ;;  %v3959_v34 = vld [vmem:[%s5958_s3 + $0x394] ss:$40 sps:$4 sm:$0xff]  }
 0x2d2   :  { %v4007_v1 = vpop.eup %4006  ;;  %v597_v39 = vmul.f32 %v4005_v56, %v5221_v61  ;;  %v3911_v61 = vld [vmem:[%s5958_s3 + $0x38c] ss:$40 sps:$4 sm:$0xff]  }
 0x2d3   :  { %v4009_v42 = vpop.eup %4008  ;;  %v599_v51 = vmul.f32 %v4007_v1, %v5232_v16  ;;  %611 = vst [vmem:[#allocation4 + $0x18] sm:$0xff] %v595_v45  ;;  %v3962_v56 = vld [vmem:[%s5958_s3 + $0x3e4] ss:$40 sps:$4 sm:$0xff]   ;;  %v3965_v45 = vld [vmem:[%s5958_s3 + $0x434] ss:$40 sps:$4 sm:$0xff]  }
 0x2d4   :  { %2977 = vmatpush1.bf16.msra.mxu1 %v3897_v33  ;;  %v4011_v53 = vpop.eup %4010  ;;  %v601_v8 = vmul.f32 %v4009_v42, %v5245_v23  ;;  %612 = vst [vmem:[#allocation4 + $0x20] sm:$0xff] %v597_v39  ;;  %v3947_v33 = vld [vmem:[%s5958_s3 + $0x254] ss:$40 sps:$4 sm:$0xff]   ;;  %v3963_v1 = vld [vmem:[%s5958_s3 + $0x430] ss:$40 sps:$4 sm:$0xff]  }
 0x2d5   :  { %2978 = vmatprep.subr.bf16.mxu1 %v3902_v58  ;;  %v4013_v7 = vpop.eup %4012  ;;  %v603_v60 = vmul.f32 %v4011_v53, %v5258_v27  ;;  %613 = vst [vmem:[#allocation4 + $0x28] sm:$0xff] %v599_v51  ;;  %v3914_v27 = vld [vmem:[%s5958_s3 + $0x3dc] ss:$40 sps:$4 sm:$0xff]   ;;  %v3966_v39 = vld [vmem:[%s5958_s3 + $0x480] ss:$40 sps:$4 sm:$0xff]   ;;  %v1999_v53 = vsub.s32 2, %v5267_v36 }
 0x2d6   :  { %v4015_v24 = vpop.eup %4014  ;;  %v605_v16 = vmul.f32 %v4013_v7, %v5270_v28  ;;  %614 = vst [vmem:[#allocation4 + $0x30] sm:$0xff] %v601_v8  ;;  %v3912_v28 = vld [vmem:[%s5958_s3 + $0x3d8] ss:$40 sps:$4 sm:$0xff]   ;;  %v3971_v42 = vld [vmem:[%s5958_s3 + $0x4d4] ss:$40 sps:$4 sm:$0xff]   ;;  %v2003_v8 = vsub.s32 3, %v5267_v36 }
 0x2d7   :  { %v607_v23 = vmul.f32 %v4015_v24, %v5277_v40  ;;  %615 = vst [vmem:[#allocation4 + $0x38] sm:$0xff] %v603_v60  ;;  %v3917_v40 = vld [vmem:[%s5958_s3 + $0x42c] ss:$40 sps:$4 sm:$0xff]   ;;  %v3969_v51 = vld [vmem:[%s5958_s3 + $0x4d0] ss:$40 sps:$4 sm:$0xff]   ;;  %v2000_v7 = vrot.slane %v5841_v29, %v1999_v53 }
 0x2d8   :  { %2979 = vmatpush1.bf16.msra.mxu1 %v3900_v13  ;;  %616 = vst [vmem:[#allocation4 + $0x40] sm:$0xff] %v605_v16  ;;  %v3950_v13 = vld [vmem:[%s5958_s3 + $0x2a4] ss:$40 sps:$4 sm:$0xff]  }
 0x2d9   :  { %2980 = vmatprep.subr.bf16.mxu1 %v3905_v9  ;;  %617 = vst.msk [vmem:[#allocation4 + $0x48] sm:$0xff] %vm6038_vm1, %v607_v23  ;;  %v3953_v9 = vld [vmem:[%s5958_s3 + $0x2f4] ss:$40 sps:$4 sm:$0xff]  }
 0x2dc   :  { %2981 = vmatpush1.bf16.msra.mxu1 %v3903_v50  ;;  %v3960_v50 = vld [vmem:[%s5958_s3 + $0x3e0] ss:$40 sps:$4 sm:$0xff]  }
 0x2dd   :  { %2982 = vmatprep.subr.bf16.mxu1 %v3908_v38  ;;  %v3968_v38 = vld [vmem:[%s5958_s3 + $0x484] ss:$40 sps:$4 sm:$0xff]  }
 0x2e0   :  { %2983 = vmatpush1.bf16.msra.mxu1 %v3906_v48  ;;  %v2004_v48 = vrot.slane %v5841_v29, %v2003_v8 }
 0x2e1   :  { %2984 = vmatprep.subr.bf16.mxu1 %v3911_v61 }
 0x2e4   :  { %2985 = vmatpush1.bf16.msra.mxu1 %v3909_v17 }
 0x2e5   :  { %2986 = vmatprep.subr.bf16.mxu1 %v3914_v27 }
 0x2e8   :  { %2987 = vmatpush1.bf16.msra.mxu1 %v3912_v28  ;;  %v2007_v28 = vsub.s32 4, %v5267_v36 }
 0x2e9   :  { %2988 = vmatprep.subr.bf16.mxu1 %v3917_v40 }
 0x2ea   :  { %v2008_v40 = vrot.slane %v5841_v29, %v2007_v28 }
 0x2ec   :  { %2989 = vmatpush1.bf16.msra.mxu1 %v3915_v4 }
 0x2ed   :  { %2990 = vmatprep.subr.bf16.mxu1 %v3920_v35 }
 0x2f0   :  { %2991 = vmatpush1.bf16.msra.mxu1 %v3918_v5 }
 0x2f1   :  { %2992 = vmatprep.subr.bf16.mxu1 %v3923_v0 }
 0x2f4   :  { %2993 = vmatpush1.bf16.msra.mxu1 %v3921_v6 }
 0x2f5   :  { %3003 = vmatprep.subr.bf16.mxu1 %v3926_v18 }
 0x2f7   :  { %2995 = vmatmul.mubr.bf16.vlgmr.msra.gmra.mrb[12].mxu1 %v5344_v21 }
 0x2f8   :  { %3004 = vmatpush1.bf16.msra.mxu1 %v3924_v43  ;;  %3035 = vmatprep.mubr.bf16.mxu1 %v5339_v37  ;;  %v3933_v37 = vld [vmem:[%s5958_s3 + $0x110] ss:$40 sps:$4 sm:$0xff]   ;;  %s4068_s3 = smov [#allocation4]  }
 0x2f9   :  { %3005 = vmatprep.subr.bf16.mxu1 %v3929_v32  ;;  %s3108_s28 = sshll.u32 %s4068_s3, 4  ;;  %s3109_s28 = int_to_ptr.vmem [resolvable:$true] %s3108_s28 }
 0x2fa   :  { %s4018_s29 = scalar_lea.vmem %s3109_s28, 1280  ;;  %p4023_p1 = scmp.lt.s32.totalorder %s3109_s28, %s3109_s28 }
 0x2fb   :  { %p4019_p0 = scmp.ne.s32.totalorder %s3109_s28, %s4018_s29  ;;  %p4024_p2 = scmp.lt.s32.totalorder %s4018_s29, %s4018_s29 }
 0x2fc   :  { %3006 = vmatpush1.bf16.msra.mxu1 %v3927_v19 }
 0x2fd   :  { %3007 = vmatprep.subr.bf16.mxu1 %v3932_v2  ;;  %p4025_p3 = por %p4024_p2, %p4023_p1 }
 0x2ff   :  { %p4026_p4 = pnand %p4025_p3, %p4019_p0 }
 0x300   :  { %3008 = vmatpush1.bf16.msra.mxu1 %v3930_v25 }
 0x301   :  { %3009 = vmatprep.subr.bf16.mxu1 %v3935_v57 }
 0x304   :  { %3010 = vmatpush1.bf16.msra.mxu1 %v3933_v37 }
 0x305   :  { %3011 = vmatprep.subr.bf16.mxu1 %v3938_v22 }
 0x308   :  { %3012 = vmatpush1.bf16.msra.mxu1 %v3936_v54 }
 0x309   :  { %3013 = vmatprep.subr.bf16.mxu1 %v3941_v15 }
 0x30a   :  { %v2873_v30 = vpop.f32.mrb[0].mxu1 }
 0x30b   :  { %v2874_v44 = vadd.f32 %v2873_v30, %v1992_v62  ;;  %v2875_v47 = vpop.f32.mrb[1].mxu1 }
 0x30c   :  { %v2876_v12 = vadd.f32 %v2875_v47, %v1996_v26  ;;  %3014 = vmatpush1.bf16.msra.mxu1 %v3939_v31  ;;  %v2877_v10 = vpop.f32.mrb[2].mxu1 }
 0x30d   :  { %v2878_v63 = vpop.f32.mrb[3].mxu1  ;;  %3015 = vmatprep.subr.bf16.mxu1 %v3944_v20 }
 0x30e   :  { %v3445_v58 = vpack.c.bf16 %v2876_v12, %v2874_v44 }
 0x310   :  { %3084 = vst [vmem:[#allocation2] sm:$0xff] %v3445_v58  ;;  %3016 = vmatpush1.bf16.msra.mxu1 %v3942_v14 }
 0x311   :  { %3017 = vmatprep.subr.bf16.mxu1 %v3947_v33 }
 0x314   :  { %3018 = vmatpush1.bf16.msra.mxu1 %v3945_v59 }
 0x315   :  { %3019 = vmatprep.subr.bf16.mxu1 %v3950_v13 }
 0x318   :  { %3020 = vmatpush1.bf16.msra.mxu1 %v3948_v11 }
 0x319   :  { %3021 = vmatprep.subr.bf16.mxu1 %v3953_v9 }
 0x31c   :  { %3022 = vmatpush1.bf16.msra.mxu1 %v3951_v3 }
 0x31d   :  { %3023 = vmatprep.subr.bf16.mxu1 %v3956_v41 }
 0x320   :  { %3024 = vmatpush1.bf16.msra.mxu1 %v3954_v49 }
 0x321   :  { %3025 = vmatprep.subr.bf16.mxu1 %v3959_v34 }
 0x324   :  { %3026 = vmatpush1.bf16.msra.mxu1 %v3957_v52 }
 0x325   :  { %3027 = vmatprep.subr.bf16.mxu1 %v3962_v56 }
 0x328   :  { %3028 = vmatpush1.bf16.msra.mxu1 %v3960_v50 }
 0x329   :  { %3029 = vmatprep.subr.bf16.mxu1 %v3965_v45 }
 0x32c   :  { %3030 = vmatpush1.bf16.msra.mxu1 %v3963_v1 }
 0x32d   :  { %3031 = vmatprep.subr.bf16.mxu1 %v3968_v38 }
 0x330   :  { %3032 = vmatpush1.bf16.msra.mxu1 %v3966_v39 }
 0x331   :  { %3033 = vmatprep.subr.bf16.mxu1 %v3971_v42 }
 0x334   :  { %3034 = vmatpush1.bf16.msra.mxu1 %v3969_v51 }
 0x337   :  { %3036 = vmatmul.mubr.bf16.vlgmr.msra.gmra.mrb[16].mxu1 %v5344_v21  ;;  %v2011_v21 = vsub.s32 5, %v5267_v36 }
 0x339   :  { %v2012_v4 = vrot.slane %v5841_v29, %v2011_v21 }
 0x34a   :  { %v2914_v60 = vpop.f32.mrb[4].mxu1 }
 0x34b   :  { %v2915_v24 = vadd.f32 %v2914_v60, %v2000_v7  ;;  %v2916_v61 = vpop.f32.mrb[5].mxu1 }
 0x34c   :  { %v2917_v16 = vadd.f32 %v2916_v61, %v2004_v48  ;;  %v2918_v23 = vpop.f32.mrb[6].mxu1 }
 0x34d   :  { %v2919_v17 = vpop.f32.mrb[7].mxu1 }
 0x34e   :  { %v3446_v27 = vpack.c.bf16 %v2917_v16, %v2915_v24 }
 0x350   :  { %3085 = vst [vmem:[#allocation2 + $0x8] sm:$0xff] %v3446_v27 }
 0x38a   :  { %v2955_v35 = vpop.f32.mrb[8].mxu1 }
 0x38b   :  { %v2956_v5 = vadd.f32 %v2955_v35, %v2008_v40  ;;  %v2957_v0 = vpop.f32.mrb[9].mxu1 }
 0x38c   :  { %v2958_v6 = vadd.f32 %v2957_v0, %v2012_v4  ;;  %v2959_v18 = vpop.f32.mrb[10].mxu1 }
 0x38d   :  { %v2960_v43 = vpop.f32.mrb[11].mxu1 }
 0x38e   :  { %v3447_v32 = vpack.c.bf16 %v2958_v6, %v2956_v5 }
 0x390   :  { %3086 = vst [vmem:[#allocation2 + $0x10] sm:$0xff] %v3447_v32 }
 0x391   :  { %4029 = shalt.err (!%p4026_p4)
}
 0x392   :  { %s4030_s8 = scalar_lea.hbm %s5961_s6, 1280 }
 0x393   :  { %p4031_p5 = scmp.ne.s32.totalorder %s5961_s6, %s4030_s8  ;;  %p4034_p6 = scmp.lt.u32.totalorder %s4030_s8, %s5961_s6 }
 0x395   :  { %p4036_p7 = pnand %p4034_p6, %p4031_p5 }
 0x397   :  { %4039 = shalt.err (!%p4036_p7)
}
 0x398   :  { %3111 = dma.vmem_to_hbm [thread:$0]  %s3109_s28, 1280, %s5961_s6, [#allocation5]   ;;  %v2015_v19 = vsub.s32 6, %v5267_v36  ;;  %v2019_v2 = vsub.s32 7, %v5267_v36  ;;  %v1986_v20 = vld [vmem:[%s5959_s4 + $0x8] sm:$0x3] }
 0x399   :  { %v2024_v30 = vrot.slane %v1986_v20, %v5294_v46  ;;  %v2028_v36 = vrot.slane %v1986_v20, %v5297_v55  ;;  %vm3088_vm15 = vcmask 1043456   ;;  %vm3089_vm0 = vcmask 195588   ;;  %s4069_s6 = smov [#allocation2]  }
 0x39a   :  { %v2016_v25 = vrot.slane %v5841_v29, %v2015_v19  ;;  %v2020_v57 = vrot.slane %v5841_v29, %v2019_v2  ;;  %s3098_s15 = sshll.u32 %s4069_s6, 4  ;;  %vm3090_vm6 = vmor %vm3089_vm0, %vm3088_vm15  ;;  %s3099_s15 = int_to_ptr.vmem [resolvable:$true] %s3098_s15 }
 0x39b   :  { %s4040_s2 = scalar_lea.vmem %s3099_s15, 640  ;;  %p4045_p9 = scmp.lt.s32.totalorder %s3099_s15, %s3099_s15 }
 0x39c   :  { %p4041_p8 = scmp.ne.s32.totalorder %s3099_s15, %s4040_s2  ;;  %p4046_p10 = scmp.lt.s32.totalorder %s4040_s2, %s4040_s2 }
 0x39e   :  { %p4047_p11 = por %p4046_p10, %p4045_p9 }
 0x3a0   :  { %p4048_p12 = pnand %p4047_p11, %p4041_p8 }
 0x3ca   :  { %v2996_v37 = vpop.f32.mrb[12].mxu1 }
 0x3cb   :  { %v2997_v22 = vadd.f32 %v2996_v37, %v2016_v25  ;;  %v2998_v54 = vpop.f32.mrb[13].mxu1 }
 0x3cc   :  { %v2999_v15 = vadd.f32 %v2998_v54, %v2020_v57  ;;  %v3000_v62 = vpop.f32.mrb[14].mxu1 }
 0x3cd   :  { %v3001_v31 = vpop.f32.mrb[15].mxu1 }
 0x3ce   :  { %v3448_v26 = vpack.c.bf16 %v2999_v15, %v2997_v22 }
 0x3d0   :  { %3087 = vst [vmem:[#allocation2 + $0x18] sm:$0xff] %v3448_v26 }
 0x40a   :  { %v3037_v44 = vpop.f32.mrb[16].mxu1 }
 0x40b   :  { %v3038_v29 = vadd.f32 %v3037_v44, %v2024_v30  ;;  %v3039_v47 = vpop.f32.mrb[17].mxu1 }
 0x40c   :  { %v3040_v12 = vadd.f32 %v3039_v47, %v2028_v36  ;;  %v3041_v10 = vpop.f32.mrb[18].mxu1 }
 0x40d   :  { %v3042_v14 = vpop.f32.mrb[19].mxu1 }
 0x40e   :  { %v3449_v63 = vpack.c.bf16 %v3040_v12, %v3038_v29 }
 0x410   :  { %3091 = vst.msk [vmem:[#allocation2 + $0x20] sm:$0xff] %vm3090_vm6, %v3449_v63 }
 0x411   :  { %4051 = shalt.err (!%p4048_p12)
}
 0x412   :  { %s4052_s17 = scalar_lea.hbm %s5960_s5, 640 }
 0x413   :  { %p4053_p13 = scmp.ne.s32.totalorder %s5960_s5, %s4052_s17  ;;  %p4056_p0 = scmp.lt.u32.totalorder %s4052_s17, %s5960_s5 }
 0x415   :  { %p4058_p1 = pnand %p4056_p0, %p4053_p13 }
 0x417   :  { %4061 = shalt.err (!%p4058_p1)
}
 0x418   :  { %3101 = dma.vmem_to_hbm [thread:$0]  %s3099_s15, 640, %s5960_s5, [#allocation3]  }
 0x419   :  { %4062 = dma.done.wait [#allocation3], 640  }
 0x41a   :  { %4063 = vsyncadd [#allocation3], 4294966656 }
 0x41b   :  { %4064 = dma.done.wait [#allocation5], 1280  }
 0x41c   :  { %4065 = vsyncadd [#allocation5], 4294966016 }
 0x41d   :  { %3118 = vsyncpa [#allocation3], 1 }
 0x41e   :  { %3119 = vsyncpa [#allocation5], 1 }

</bundles_post_ra>
